<compile_context>
chip_gen: v5e
topology: v5e:2x2
jax: 0.10.0
libtpu: 0.0.40
codegen_flags: <defaults>
</compile_context>

<pallas_src>
import functools

import numpy as np

import jax
import jax.numpy as jnp
from jax.experimental import pallas as pl
from jax.experimental.pallas import tpu as pltpu


DILATION_SIZES = (3, 5, 7, 9)          # assumed cfg.dilation
_N_DIL = len(DILATION_SIZES)
_PS = 8      # sublane border of the shift scratch (>= 2; multiple of 8 keeps interior aligned)
_QL = 128    # lane border of the shift scratch    (>= 2; multiple of 128 keeps interior aligned)

_TAN22 = float(np.tan(np.deg2rad(22.5)))
_TAN67 = float(np.tan(np.deg2rad(67.5)))


def _gaussian_taps(ksize=5, sigma=1.0):
    x = np.arange(ksize, dtype=np.float64) - ksize // 2
    g = np.exp(-(x * x) / (2.0 * sigma * sigma))
    g = g / g.sum()
    return tuple(float(v) for v in g)


def _reflect_idx(s, n):
    """torch/np 'reflect' padding index (edge pixel not repeated)."""
    while s < 0 or s >= n:
        s = -s if s < 0 else 2 * (n - 1) - s
    return s


# ---------------------------------------------------------------------------
# Pallas kernel: one batch element per grid step
# ---------------------------------------------------------------------------
def _canny_kernel(H, W, x_ref, out_ref, pad_ref):
    hp, wp = out_ref.shape[1], out_ref.shape[2]
    ps, ql = _PS, _QL
    g0, g1, g2, _, _ = _gaussian_taps()          # symmetric taps: g0==g4, g1==g3

    def put(v):                                  # stage a full (hp, wp) plane (aligned store)
        pad_ref[pl.ds(ps, hp), pl.ds(ql, wp)] = v

    def put_row(r, v):                           # one interior-width border row at row ps+r
        pad_ref[pl.ds(ps + r, 1), pl.ds(ql, wp)] = v

    def put_col(c, v):                           # one interior-height border col at col ql+c
        pad_ref[pl.ds(ps, hp), pl.ds(ql + c, 1)] = v

    def sh(dr, dc):                              # window load: out[i,j] = staged[i+dr, j+dc]
        return pad_ref[pl.ds(ps + dr, hp), pl.ds(ql + dc, wp)]

    # ---- grayscale (input channel order is BGR -> bgr_to_rgb -> rgb_to_grayscale) ----
    gray = 0.299 * x_ref[2] + 0.587 * x_ref[1] + 0.114 * x_ref[0]

    # ---- 5x5 gaussian blur, sigma=1, reflect padding (kornia gaussian_blur2d) ----
    # vertical pass: stage gray with 2 reflect rows on each side (w.r.t. the valid H).
    put(gray)
    for dr in (-2, -1, H, H + 1):
        r = _reflect_idx(dr, H)
        put_row(dr, gray[r:r + 1, :])
    blur_v = g0 * (sh(-2, 0) + sh(2, 0)) + g1 * (sh(-1, 0) + sh(1, 0)) + g2 * gray
    # horizontal pass: stage blur_v with 2 reflect cols on each side (w.r.t. the valid W).
    put(blur_v)
    for dc in (-2, -1, W, W + 1):
        c = _reflect_idx(dc, W)
        put_col(dc, blur_v[:, c:c + 1])
    blur = g0 * (sh(0, -2) + sh(0, 2)) + g1 * (sh(0, -1) + sh(0, 1)) + g2 * blur_v

    # ---- 3x3 sobel, replicate padding, un-normalized (kornia canny convention) ----
    # vertical stage shared by gx ([1,2,1]^T smoothing) and gy ([-1,0,1]^T difference).
    put(blur)
    put_row(-1, blur[0:1, :])
    put_row(H, blur[H - 1:H, :])
    up, down = sh(-1, 0), sh(1, 0)
    gx_v = up + 2.0 * blur + down
    gy_v = down - up
    # horizontal finish: gx = d/dx, gy = [1,2,1] smoothing.
    put(gx_v)
    put_col(-1, gx_v[:, 0:1])
    put_col(W, gx_v[:, W - 1:W])
    gx = sh(0, 1) - sh(0, -1)
    put(gy_v)
    put_col(-1, gy_v[:, 0:1])
    put_col(W, gy_v[:, W - 1:W])
    gy = sh(0, -1) + 2.0 * gy_v + sh(0, 1)

    mag = jnp.sqrt(gx * gx + gy * gy + 1e-6)

    # Zero the padded (cropped-away) region so neighbour reads there are exactly 0,
    # matching kornia's zero-padded NMS conv / dilation border handling.
    if H < hp or W < wp:
        rows = jax.lax.broadcasted_iota(jnp.int32, (hp, wp), 0)
        cols = jax.lax.broadcasted_iota(jnp.int32, (hp, wp), 1)
        mag = jnp.where(jnp.logical_and(rows < H, cols < W), mag, 0.0)

    # Re-zero ONLY the distance-1 border strips dirtied by the reflect/replicate staging
    # (no full-scratch clears; safe on megacore since it is done every step).
    zrow = jnp.zeros((1, pad_ref.shape[1]), jnp.float32)
    zcol = jnp.zeros((pad_ref.shape[0], 1), jnp.float32)
    pad_ref[pl.ds(ps - 1, 1), :] = zrow
    pad_ref[pl.ds(ps + hp, 1), :] = zrow
    pad_ref[:, pl.ds(ql - 1, 1)] = zcol
    pad_ref[:, pl.ds(ql + wp, 1)] = zcol

    # ---- canny non-maximum suppression (== kornia.canny()[0]) ----
    # is_max only depends on the unordered pair of opposite neighbours, so 4 classes from
    # |gy| / |gx| ratios and sign(gx*gy) suffice; ties at 22.5/67.5 deg go to the
    # axis-aligned class (kornia round-half-to-even).
    put(mag)
    ax, ay = jnp.abs(gx), jnp.abs(gy)
    is_h = ay <= _TAN22 * ax           # ~0 / 180 deg   -> neighbours (0, +-1)
    is_v = ay >= _TAN67 * ax           # ~90 / 270 deg  -> neighbours (+-1, 0)
    is_d1 = (gx * gy) >= 0.0           # ~45 / 225 deg  -> neighbours (+-1, +-1)
    nb_h = jnp.maximum(sh(0, 1), sh(0, -1))
    nb_v = jnp.maximum(sh(1, 0), sh(-1, 0))
    nb_d1 = jnp.maximum(sh(1, 1), sh(-1, -1))
    nb_d2 = jnp.maximum(sh(1, -1), sh(-1, 1))
    nb = jnp.where(is_h, nb_h, jnp.where(is_v, nb_v, jnp.where(is_d1, nb_d1, nb_d2)))
    cur = jnp.where(mag > nb, mag, 0.0)
    out_ref[0] = cur

    # ---- flat dilations: iterated separable 3x3 window max (exact for ones SEs) ----
    for ri in range(_N_DIL):
        put(cur)
        col_run = jnp.maximum(cur, jnp.maximum(sh(0, -1), sh(0, 1)))
        put(col_run)
        cur = jnp.maximum(col_run, jnp.maximum(sh(-1, 0), sh(1, 0)))
        out_ref[1 + ri] = cur


# ---------------------------------------------------------------------------
# Wrapper
# ---------------------------------------------------------------------------
def _round_up(x, m):
    return ((x + m - 1) // m) * m


def canny_edge_forward(x):
    """Returns (nms_magnitude, dil3, dil5, dil7, dil9, channel_shuffled_x) -- NCHW float32."""
    x = jnp.asarray(x, jnp.float32)
    N, C, H, W = x.shape
    assert C == 3, "canny_edge expects 3-channel (BGR) input"
    assert H >= 4 and W >= 4

    Hp = _round_up(H, 8)
    Wp = _round_up(W, 128)

    xp = x
    if Hp != H or Wp != W:
        xp = jnp.pad(x, ((0, 0), (0, 0), (0, Hp - H), (0, Wp - W)))

    kernel = functools.partial(_canny_kernel, H, W)

    plane = Hp * Wp * 4
    scratch_bytes = (Hp + 2 * _PS) * (Wp + 2 * _QL) * 4
    # per-step footprint: double-buffered in/out blocks + scratch + live plane temporaries;
    # capped at 64 MiB so the same code compiles on v7x (64 MiB VMEM) as well as v5e/v6e.
    vmem_limit = int(min(64 * 2 ** 20,
                         max(32 * 2 ** 20,
                             (2 * 3 + 2 * 5 + 16) * plane + scratch_bytes)))

    cost = pl.CostEstimate(
        flops=N * 90 * Hp * Wp,
        transcendentals=N * Hp * Wp,
        bytes_accessed=N * (3 + 5) * plane,
    )

    stacked = pl.pallas_call(
        kernel,
        grid=(N,),
        in_specs=[pl.BlockSpec((None, C, Hp, Wp), lambda n: (n, 0, 0, 0))],
        out_specs=pl.BlockSpec((None, 1 + _N_DIL, Hp, Wp), lambda n: (n, 0, 0, 0)),
        out_shape=jax.ShapeDtypeStruct((N, 1 + _N_DIL, Hp, Wp), jnp.float32),
        scratch_shapes=[
            pltpu.VMEM((Hp + 2 * _PS, Wp + 2 * _QL), jnp.float32),
        ],
        compiler_params=pltpu.CompilerParams(
            dimension_semantics=("parallel",),
            vmem_limit_bytes=vmem_limit,
        ),
        cost_estimate=cost,
    )(xp)

    if Hp != H or Wp != W:
        stacked = stacked[:, :, :H, :W]
    mag = stacked[:, 0:1]
    dils = [stacked[:, i:i + 1] for i in range(1, 1 + _N_DIL)]

    # x_out5 = RandomChannelShuffle(p=0.75)(x) -- pure channel permutation, done in glue.
    # TODO(synk): kornia RandomChannelShuffle uses torch RNG; reproduced with a fixed JAX key.
    key = jax.random.PRNGKey(123)
    k_apply, k_perm = jax.random.split(key)
    apply_mask = jax.random.uniform(k_apply, (N,)) < 0.75
    perms = jnp.stack(
        [jax.random.permutation(jax.random.fold_in(k_perm, i), C) for i in range(N)])
    shuffled = jnp.take_along_axis(x, perms[:, :, None, None], axis=1)
    x_out5 = jnp.where(apply_mask[:, None, None, None], shuffled, x)

    # self._apply_color_jitter defaults to False -> ColorJitter branch is dead code.
    return (mag, dils[0], dils[1], dils[2], dils[3], x_out5)


# ---------------------------------------------------------------------------
# Pure-JAX reference (self-test only)
# ---------------------------------------------------------------------------
def _jnp_reference(x):
    """Pure-jnp reference of the canny front-end (magnitude, NMS'd magnitude, ambiguity mask)."""
    N, C, H, W = x.shape
    gray = 0.299 * x[:, 2] + 0.587 * x[:, 1] + 0.114 * x[:, 0]
    g5 = _gaussian_taps()
    p = jnp.pad(gray, ((0, 0), (2, 2), (0, 0)), mode="reflect")
    bv = sum(g5[t] * p[:, t:t + H, :] for t in range(5))
    p = jnp.pad(bv, ((0, 0), (0, 0), (2, 2)), mode="reflect")
    bl = sum(g5[t] * p[:, :, t:t + W] for t in range(5))
    p = jnp.pad(bl, ((0, 0), (1, 1), (0, 0)), mode="edge")
    gxv = p[:, 0:H] + 2.0 * p[:, 1:H + 1] + p[:, 2:H + 2]
    gyv = p[:, 2:H + 2] - p[:, 0:H]
    p = jnp.pad(gxv, ((0, 0), (0, 0), (1, 1)), mode="edge")
    gx = p[:, :, 2:W + 2] - p[:, :, 0:W]
    p = jnp.pad(gyv, ((0, 0), (0, 0), (1, 1)), mode="edge")
    gy = p[:, :, 0:W] + 2.0 * p[:, :, 1:W + 1] + p[:, :, 2:W + 2]
    mag = jnp.sqrt(gx * gx + gy * gy + 1e-6)

    mp = jnp.pad(mag, ((0, 0), (1, 1), (1, 1)))
    shm = lambda dr, dc: mp[:, 1 + dr:1 + dr + H, 1 + dc:1 + dc + W]
    ax, ay = jnp.abs(gx), jnp.abs(gy)
    is_h = ay <= _TAN22 * ax
    is_v = ay >= _TAN67 * ax
    is_d1 = (gx * gy) >= 0.0
    nb_h = jnp.maximum(shm(0, 1), shm(0, -1))
    nb_v = jnp.maximum(shm(1, 0), shm(-1, 0))
    nb_d1 = jnp.maximum(shm(1, 1), shm(-1, -1))
    nb_d2 = jnp.maximum(shm(1, -1), shm(-1, 1))
    nb = jnp.where(is_h, nb_h, jnp.where(is_v, nb_v, jnp.where(is_d1, nb_d1, nb_d2)))
    nms = jnp.where(mag > nb, mag, 0.0)
    # pixels whose keep/suppress decision could flip under tiny fp reassociation differences
    amb = ((jnp.abs(mag - nb) < 1e-4)
           | (jnp.abs(ay - _TAN22 * ax) < 1e-4)
           | (jnp.abs(ay - _TAN67 * ax) < 1e-4)
           | (ax < 1e-4) | (ay < 1e-4))
    return mag, nms, amb


if __name__ == "__main__":
    key = jax.random.PRNGKey(0)
    x = jax.random.uniform(key, (2, 3, 16, 16), dtype=jnp.float32)

    outs = canny_edge_forward(x)
    outs = jax.block_until_ready(outs)

    N, C, H, W = x.shape
    assert all(o.shape == (N, 1, H, W) for o in outs[:5])
    assert outs[5].shape == (N, C, H, W)
    assert all(bool(jnp.isfinite(o).all()) for o in outs)

    # Value check of the blur/sobel/NMS front-end against a pure-JAX reference
    # (fp-tie-sensitive pixels excluded via the ambiguity mask).
    mag_ref, nms_ref, amb = _jnp_reference(x)
    nms_k = outs[0][:, 0]
    ok = amb | (jnp.abs(nms_k - nms_ref) <= 1e-3 * (1.0 + mag_ref))
    assert bool(ok.all()), "NMS magnitude mismatch vs pure-JAX reference"

    # Dilations must equal plain window maxima (zero border) of the kernel's own NMS plane.
    def window_max(a, r):
        p = jnp.pad(a, ((0, 0), (r, r), (r, r)))
        out = a
        for dr in range(-r, r + 1):
            for dc in range(-r, r + 1):
                out = jnp.maximum(out, p[:, r + dr:r + dr + H, r + dc:r + dc + W])
        return out

    for i, ksz in enumerate(DILATION_SIZES):
        ref_d = window_max(nms_k, ksz // 2)
        assert bool(jnp.allclose(outs[1 + i][:, 0], ref_d, atol=1e-6)), f"dilation {ksz} mismatch"

    # Growing structuring elements -> pointwise non-decreasing outputs.
    for a, b in zip(outs[:4], outs[1:5]):
        assert bool(jnp.all(b >= a))

    print("KERNEL_OK")
</pallas_src>

<mosaic_0001>
module attributes {stable_mosaic.version = 11 : i64} {
  func.func @_canny_kernel(%arg0: i32, %arg1: memref<1x3x16x128xf32, #tpu.memory_space<vmem>>, %arg2: memref<1x5x16x128xf32, #tpu.memory_space<vmem>>, %arg3: memref<32x384xf32, #tpu.memory_space<vmem>>) attributes {dimension_semantics = [#tpu.dimension_semantics<parallel>], iteration_bounds = array<i64: 2>, scalar_prefetch = 0 : i64, scratch_operands = 1 : i64, tpu.core_type = #tpu.core_type<tc>, window_params = [{transform_indices = @transform_0, window_bounds = array<i64: 1, 3, 16, 128>}, {transform_indices = @transform_1, window_bounds = array<i64: 1, 5, 16, 128>}]} {
    %c0 = arith.constant 0 : index
    %c2 = arith.constant 2 : index
    %c0_0 = arith.constant 0 : index
    %c0_1 = arith.constant 0 : index
    %0 = vector.load %arg1[%c0, %c2, %c0_0, %c0_1] : memref<1x3x16x128xf32, #tpu.memory_space<vmem>>, vector<1x1x16x128xf32>
    %1 = vector.shape_cast %0 : vector<1x1x16x128xf32> to vector<16x128xf32>
    %cst = arith.constant 2.990000e-01 : f32
    %2 = vector.broadcast %cst : f32 to vector<16x128xf32>
    %3 = arith.mulf %2, %1 : vector<16x128xf32>
    %c0_2 = arith.constant 0 : index
    %c1 = arith.constant 1 : index
    %c0_3 = arith.constant 0 : index
    %c0_4 = arith.constant 0 : index
    %4 = vector.load %arg1[%c0_2, %c1, %c0_3, %c0_4] : memref<1x3x16x128xf32, #tpu.memory_space<vmem>>, vector<1x1x16x128xf32>
    %5 = vector.shape_cast %4 : vector<1x1x16x128xf32> to vector<16x128xf32>
    %cst_5 = arith.constant 5.870000e-01 : f32
    %6 = vector.broadcast %cst_5 : f32 to vector<16x128xf32>
    %7 = arith.mulf %6, %5 : vector<16x128xf32>
    %8 = arith.addf %3, %7 : vector<16x128xf32>
    %c0_6 = arith.constant 0 : index
    %c0_7 = arith.constant 0 : index
    %c0_8 = arith.constant 0 : index
    %c0_9 = arith.constant 0 : index
    %9 = vector.load %arg1[%c0_6, %c0_7, %c0_8, %c0_9] : memref<1x3x16x128xf32, #tpu.memory_space<vmem>>, vector<1x1x16x128xf32>
    %10 = vector.shape_cast %9 : vector<1x1x16x128xf32> to vector<16x128xf32>
    %cst_10 = arith.constant 1.140000e-01 : f32
    %11 = vector.broadcast %cst_10 : f32 to vector<16x128xf32>
    %12 = arith.mulf %11, %10 : vector<16x128xf32>
    %13 = arith.addf %8, %12 : vector<16x128xf32>
    %c8 = arith.constant 8 : index
    %c128 = arith.constant 128 : index
    %14 = vector.load %arg3[%c8, %c128] : memref<32x384xf32, #tpu.memory_space<vmem>>, vector<16x128xf32>
    tpu.vector_store %arg3[%c8, %c128], %13 {strides = array<i32>} : memref<32x384xf32, #tpu.memory_space<vmem>>, vector<16x128xf32>,
    %15 = vector.extract_strided_slice %13 {offsets = [2, 0], sizes = [1, 128], strides = [1, 1]} : vector<16x128xf32> to vector<1x128xf32>
    %c6 = arith.constant 6 : index
    %c128_11 = arith.constant 128 : index
    %16 = vector.load %arg3[%c6, %c128_11] : memref<32x384xf32, #tpu.memory_space<vmem>>, vector<1x128xf32>
    tpu.vector_store %arg3[%c6, %c128_11], %15 {strides = array<i32>} : memref<32x384xf32, #tpu.memory_space<vmem>>, vector<1x128xf32>,
    %17 = vector.extract_strided_slice %13 {offsets = [1, 0], sizes = [1, 128], strides = [1, 1]} : vector<16x128xf32> to vector<1x128xf32>
    %c7 = arith.constant 7 : index
    %c128_12 = arith.constant 128 : index
    %18 = vector.load %arg3[%c7, %c128_12] : memref<32x384xf32, #tpu.memory_space<vmem>>, vector<1x128xf32>
    tpu.vector_store %arg3[%c7, %c128_12], %17 {strides = array<i32>} : memref<32x384xf32, #tpu.memory_space<vmem>>, vector<1x128xf32>,
    %19 = vector.extract_strided_slice %13 {offsets = [14, 0], sizes = [1, 128], strides = [1, 1]} : vector<16x128xf32> to vector<1x128xf32>
    %c24 = arith.constant 24 : index
    %c128_13 = arith.constant 128 : index
    %20 = vector.load %arg3[%c24, %c128_13] : memref<32x384xf32, #tpu.memory_space<vmem>>, vector<1x128xf32>
    tpu.vector_store %arg3[%c24, %c128_13], %19 {strides = array<i32>} : memref<32x384xf32, #tpu.memory_space<vmem>>, vector<1x128xf32>,
    %21 = vector.extract_strided_slice %13 {offsets = [13, 0], sizes = [1, 128], strides = [1, 1]} : vector<16x128xf32> to vector<1x128xf32>
    %c25 = arith.constant 25 : index
    %c128_14 = arith.constant 128 : index
    %22 = vector.load %arg3[%c25, %c128_14] : memref<32x384xf32, #tpu.memory_space<vmem>>, vector<1x128xf32>
    tpu.vector_store %arg3[%c25, %c128_14], %21 {strides = array<i32>} : memref<32x384xf32, #tpu.memory_space<vmem>>, vector<1x128xf32>,
    %c6_15 = arith.constant 6 : index
    %c128_16 = arith.constant 128 : index
    %23 = vector.load %arg3[%c6_15, %c128_16] : memref<32x384xf32, #tpu.memory_space<vmem>>, vector<16x128xf32>
    %c10 = arith.constant 10 : index
    %c128_17 = arith.constant 128 : index
    %24 = vector.load %arg3[%c10, %c128_17] : memref<32x384xf32, #tpu.memory_space<vmem>>, vector<16x128xf32>
    %25 = arith.addf %23, %24 : vector<16x128xf32>
    %cst_18 = arith.constant 0.054488685 : f32
    %26 = vector.broadcast %cst_18 : f32 to vector<16x128xf32>
    %27 = arith.mulf %26, %25 : vector<16x128xf32>
    %c7_19 = arith.constant 7 : index
    %c128_20 = arith.constant 128 : index
    %28 = vector.load %arg3[%c7_19, %c128_20] : memref<32x384xf32, #tpu.memory_space<vmem>>, vector<16x128xf32>
    %c9 = arith.constant 9 : index
    %c128_21 = arith.constant 128 : index
    %29 = vector.load %arg3[%c9, %c128_21] : memref<32x384xf32, #tpu.memory_space<vmem>>, vector<16x128xf32>
    %30 = arith.addf %28, %29 : vector<16x128xf32>
    %cst_22 = arith.constant 0.244201347 : f32
    %31 = vector.broadcast %cst_22 : f32 to vector<16x128xf32>
    %32 = arith.mulf %31, %30 : vector<16x128xf32>
    %33 = arith.addf %27, %32 : vector<16x128xf32>
    %cst_23 = arith.constant 0.402619958 : f32
    %34 = vector.broadcast %cst_23 : f32 to vector<16x128xf32>
    %35 = arith.mulf %34, %13 : vector<16x128xf32>
    %36 = arith.addf %33, %35 : vector<16x128xf32>
    %c8_24 = arith.constant 8 : index
    %c128_25 = arith.constant 128 : index
    %37 = vector.load %arg3[%c8_24, %c128_25] : memref<32x384xf32, #tpu.memory_space<vmem>>, vector<16x128xf32>
    tpu.vector_store %arg3[%c8_24, %c128_25], %36 {strides = array<i32>} : memref<32x384xf32, #tpu.memory_space<vmem>>, vector<16x128xf32>,
    %38 = vector.extract_strided_slice %36 {offsets = [0, 2], sizes = [16, 1], strides = [1, 1]} : vector<16x128xf32> to vector<16x1xf32>
    %c8_26 = arith.constant 8 : index
    %c126 = arith.constant 126 : index
    %39 = vector.load %arg3[%c8_26, %c126] : memref<32x384xf32, #tpu.memory_space<vmem>>, vector<16x1xf32>
    tpu.vector_store %arg3[%c8_26, %c126], %38 {strides = array<i32>} : memref<32x384xf32, #tpu.memory_space<vmem>>, vector<16x1xf32>,
    %40 = vector.extract_strided_slice %36 {offsets = [0, 1], sizes = [16, 1], strides = [1, 1]} : vector<16x128xf32> to vector<16x1xf32>
    %c8_27 = arith.constant 8 : index
    %c127 = arith.constant 127 : index
    %41 = vector.load %arg3[%c8_27, %c127] : memref<32x384xf32, #tpu.memory_space<vmem>>, vector<16x1xf32>
    tpu.vector_store %arg3[%c8_27, %c127], %40 {strides = array<i32>} : memref<32x384xf32, #tpu.memory_space<vmem>>, vector<16x1xf32>,
    %42 = vector.extract_strided_slice %36 {offsets = [0, 14], sizes = [16, 1], strides = [1, 1]} : vector<16x128xf32> to vector<16x1xf32>
    %c8_28 = arith.constant 8 : index
    %c144 = arith.constant 144 : index
    %43 = vector.load %arg3[%c8_28, %c144] : memref<32x384xf32, #tpu.memory_space<vmem>>, vector<16x1xf32>
    tpu.vector_store %arg3[%c8_28, %c144], %42 {strides = array<i32>} : memref<32x384xf32, #tpu.memory_space<vmem>>, vector<16x1xf32>,
    %44 = vector.extract_strided_slice %36 {offsets = [0, 13], sizes = [16, 1], strides = [1, 1]} : vector<16x128xf32> to vector<16x1xf32>
    %c8_29 = arith.constant 8 : index
    %c145 = arith.constant 145 : index
    %45 = vector.load %arg3[%c8_29, %c145] : memref<32x384xf32, #tpu.memory_space<vmem>>, vector<16x1xf32>
    tpu.vector_store %arg3[%c8_29, %c145], %44 {strides = array<i32>} : memref<32x384xf32, #tpu.memory_space<vmem>>, vector<16x1xf32>,
    %c8_30 = arith.constant 8 : index
    %c126_31 = arith.constant 126 : index
    %46 = vector.load %arg3[%c8_30, %c126_31] : memref<32x384xf32, #tpu.memory_space<vmem>>, vector<16x128xf32>
    %c8_32 = arith.constant 8 : index
    %c130 = arith.constant 130 : index
    %47 = vector.load %arg3[%c8_32, %c130] : memref<32x384xf32, #tpu.memory_space<vmem>>, vector<16x128xf32>
    %48 = arith.addf %46, %47 : vector<16x128xf32>
    %cst_33 = arith.constant 0.054488685 : f32
    %49 = vector.broadcast %cst_33 : f32 to vector<16x128xf32>
    %50 = arith.mulf %49, %48 : vector<16x128xf32>
    %c8_34 = arith.constant 8 : index
    %c127_35 = arith.constant 127 : index
    %51 = vector.load %arg3[%c8_34, %c127_35] : memref<32x384xf32, #tpu.memory_space<vmem>>, vector<16x128xf32>
    %c8_36 = arith.constant 8 : index
    %c129 = arith.constant 129 : index
    %52 = vector.load %arg3[%c8_36, %c129] : memref<32x384xf32, #tpu.memory_space<vmem>>, vector<16x128xf32>
    %53 = arith.addf %51, %52 : vector<16x128xf32>
    %cst_37 = arith.constant 0.244201347 : f32
    %54 = vector.broadcast %cst_37 : f32 to vector<16x128xf32>
    %55 = arith.mulf %54, %53 : vector<16x128xf32>
    %56 = arith.addf %50, %55 : vector<16x128xf32>
    %cst_38 = arith.constant 0.402619958 : f32
    %57 = vector.broadcast %cst_38 : f32 to vector<16x128xf32>
    %58 = arith.mulf %57, %36 : vector<16x128xf32>
    %59 = arith.addf %56, %58 : vector<16x128xf32>
    %c8_39 = arith.constant 8 : index
    %c128_40 = arith.constant 128 : index
    %60 = vector.load %arg3[%c8_39, %c128_40] : memref<32x384xf32, #tpu.memory_space<vmem>>, vector<16x128xf32>
    tpu.vector_store %arg3[%c8_39, %c128_40], %59 {strides = array<i32>} : memref<32x384xf32, #tpu.memory_space<vmem>>, vector<16x128xf32>,
    %61 = vector.extract_strided_slice %59 {offsets = [0, 0], sizes = [1, 128], strides = [1, 1]} : vector<16x128xf32> to vector<1x128xf32>
    %c7_41 = arith.constant 7 : index
    %c128_42 = arith.constant 128 : index
    %62 = vector.load %arg3[%c7_41, %c128_42] : memref<32x384xf32, #tpu.memory_space<vmem>>, vector<1x128xf32>
    tpu.vector_store %arg3[%c7_41, %c128_42], %61 {strides = array<i32>} : memref<32x384xf32, #tpu.memory_space<vmem>>, vector<1x128xf32>,
    %63 = vector.extract_strided_slice %59 {offsets = [15, 0], sizes = [1, 128], strides = [1, 1]} : vector<16x128xf32> to vector<1x128xf32>
    %c24_43 = arith.constant 24 : index
    %c128_44 = arith.constant 128 : index
    %64 = vector.load %arg3[%c24_43, %c128_44] : memref<32x384xf32, #tpu.memory_space<vmem>>, vector<1x128xf32>
    tpu.vector_store %arg3[%c24_43, %c128_44], %63 {strides = array<i32>} : memref<32x384xf32, #tpu.memory_space<vmem>>, vector<1x128xf32>,
    %c7_45 = arith.constant 7 : index
    %c128_46 = arith.constant 128 : index
    %65 = vector.load %arg3[%c7_45, %c128_46] : memref<32x384xf32, #tpu.memory_space<vmem>>, vector<16x128xf32>
    %c9_47 = arith.constant 9 : index
    %c128_48 = arith.constant 128 : index
    %66 = vector.load %arg3[%c9_47, %c128_48] : memref<32x384xf32, #tpu.memory_space<vmem>>, vector<16x128xf32>
    %cst_49 = arith.constant 2.000000e+00 : f32
    %67 = vector.broadcast %cst_49 : f32 to vector<16x128xf32>
    %68 = arith.mulf %67, %59 : vector<16x128xf32>
    %69 = arith.addf %65, %68 : vector<16x128xf32>
    %70 = arith.addf %69, %66 : vector<16x128xf32>
    %71 = arith.subf %66, %65 : vector<16x128xf32>
    %c8_50 = arith.constant 8 : index
    %c128_51 = arith.constant 128 : index
    %72 = vector.load %arg3[%c8_50, %c128_51] : memref<32x384xf32, #tpu.memory_space<vmem>>, vector<16x128xf32>
    tpu.vector_store %arg3[%c8_50, %c128_51], %70 {strides = array<i32>} : memref<32x384xf32, #tpu.memory_space<vmem>>, vector<16x128xf32>,
    %73 = vector.extract_strided_slice %70 {offsets = [0, 0], sizes = [16, 1], strides = [1, 1]} : vector<16x128xf32> to vector<16x1xf32>
    %c8_52 = arith.constant 8 : index
    %c127_53 = arith.constant 127 : index
    %74 = vector.load %arg3[%c8_52, %c127_53] : memref<32x384xf32, #tpu.memory_space<vmem>>, vector<16x1xf32>
    tpu.vector_store %arg3[%c8_52, %c127_53], %73 {strides = array<i32>} : memref<32x384xf32, #tpu.memory_space<vmem>>, vector<16x1xf32>,
    %75 = vector.extract_strided_slice %70 {offsets = [0, 15], sizes = [16, 1], strides = [1, 1]} : vector<16x128xf32> to vector<16x1xf32>
    %c8_54 = arith.constant 8 : index
    %c144_55 = arith.constant 144 : index
    %76 = vector.load %arg3[%c8_54, %c144_55] : memref<32x384xf32, #tpu.memory_space<vmem>>, vector<16x1xf32>
    tpu.vector_store %arg3[%c8_54, %c144_55], %75 {strides = array<i32>} : memref<32x384xf32, #tpu.memory_space<vmem>>, vector<16x1xf32>,
    %c8_56 = arith.constant 8 : index
    %c129_57 = arith.constant 129 : index
    %77 = vector.load %arg3[%c8_56, %c129_57] : memref<32x384xf32, #tpu.memory_space<vmem>>, vector<16x128xf32>
    %c8_58 = arith.constant 8 : index
    %c127_59 = arith.constant 127 : index
    %78 = vector.load %arg3[%c8_58, %c127_59] : memref<32x384xf32, #tpu.memory_space<vmem>>, vector<16x128xf32>
    %79 = arith.subf %77, %78 : vector<16x128xf32>
    %c8_60 = arith.constant 8 : index
    %c128_61 = arith.constant 128 : index
    %80 = vector.load %arg3[%c8_60, %c128_61] : memref<32x384xf32, #tpu.memory_space<vmem>>, vector<16x128xf32>
    tpu.vector_store %arg3[%c8_60, %c128_61], %71 {strides = array<i32>} : memref<32x384xf32, #tpu.memory_space<vmem>>, vector<16x128xf32>,
    %81 = vector.extract_strided_slice %71 {offsets = [0, 0], sizes = [16, 1], strides = [1, 1]} : vector<16x128xf32> to vector<16x1xf32>
    %c8_62 = arith.constant 8 : index
    %c127_63 = arith.constant 127 : index
    %82 = vector.load %arg3[%c8_62, %c127_63] : memref<32x384xf32, #tpu.memory_space<vmem>>, vector<16x1xf32>
    tpu.vector_store %arg3[%c8_62, %c127_63], %81 {strides = array<i32>} : memref<32x384xf32, #tpu.memory_space<vmem>>, vector<16x1xf32>,
    %83 = vector.extract_strided_slice %71 {offsets = [0, 15], sizes = [16, 1], strides = [1, 1]} : vector<16x128xf32> to vector<16x1xf32>
    %c8_64 = arith.constant 8 : index
    %c144_65 = arith.constant 144 : index
    %84 = vector.load %arg3[%c8_64, %c144_65] : memref<32x384xf32, #tpu.memory_space<vmem>>, vector<16x1xf32>
    tpu.vector_store %arg3[%c8_64, %c144_65], %83 {strides = array<i32>} : memref<32x384xf32, #tpu.memory_space<vmem>>, vector<16x1xf32>,
    %c8_66 = arith.constant 8 : index
    %c127_67 = arith.constant 127 : index
    %85 = vector.load %arg3[%c8_66, %c127_67] : memref<32x384xf32, #tpu.memory_space<vmem>>, vector<16x128xf32>
    %cst_68 = arith.constant 2.000000e+00 : f32
    %86 = vector.broadcast %cst_68 : f32 to vector<16x128xf32>
    %87 = arith.mulf %86, %71 : vector<16x128xf32>
    %88 = arith.addf %85, %87 : vector<16x128xf32>
    %c8_69 = arith.constant 8 : index
    %c129_70 = arith.constant 129 : index
    %89 = vector.load %arg3[%c8_69, %c129_70] : memref<32x384xf32, #tpu.memory_space<vmem>>, vector<16x128xf32>
    %90 = arith.addf %88, %89 : vector<16x128xf32>
    %91 = arith.mulf %79, %79 : vector<16x128xf32>
    %92 = arith.mulf %90, %90 : vector<16x128xf32>
    %93 = arith.addf %91, %92 : vector<16x128xf32>
    %cst_71 = arith.constant 9.99999997E-7 : f32
    %94 = vector.broadcast %cst_71 : f32 to vector<16x128xf32>
    %95 = arith.addf %93, %94 : vector<16x128xf32>
    %96 = math.sqrt %95 : vector<16x128xf32>
    %97 = tpu.iota {dimensions = array<i32: 0>} : vector<16x128xi32>
    %98 = tpu.iota {dimensions = array<i32: 1>} : vector<16x128xi32>
    %c16_i32 = arith.constant 16 : i32
    %99 = vector.broadcast %c16_i32 : i32 to vector<16x128xi32>
    %100 = arith.cmpi slt, %97, %99 : vector<16x128xi32>
    %c16_i32_72 = arith.constant 16 : i32
    %101 = vector.broadcast %c16_i32_72 : i32 to vector<16x128xi32>
    %102 = arith.cmpi slt, %98, %101 : vector<16x128xi32>
    %103 = arith.andi %100, %102 : vector<16x128xi1>
    %cst_73 = arith.constant 0.000000e+00 : f32
    %104 = vector.broadcast %cst_73 : f32 to vector<16x128xf32>
    %105 = arith.select %103, %96, %104 : vector<16x128xi1>, vector<16x128xf32>
    %cst_74 = arith.constant 0.000000e+00 : f32
    %106 = vector.broadcast %cst_74 : f32 to vector<1x384xf32>
    %cst_75 = arith.constant 0.000000e+00 : f32
    %107 = vector.broadcast %cst_75 : f32 to vector<32x1xf32>
    %c7_76 = arith.constant 7 : index
    %c0_77 = arith.constant 0 : index
    %108 = vector.load %arg3[%c7_76, %c0_77] : memref<32x384xf32, #tpu.memory_space<vmem>>, vector<1x384xf32>
    tpu.vector_store %arg3[%c7_76, %c0_77], %106 {strides = array<i32>} : memref<32x384xf32, #tpu.memory_space<vmem>>, vector<1x384xf32>,
    %c24_78 = arith.constant 24 : index
    %c0_79 = arith.constant 0 : index
    %109 = vector.load %arg3[%c24_78, %c0_79] : memref<32x384xf32, #tpu.memory_space<vmem>>, vector<1x384xf32>
    tpu.vector_store %arg3[%c24_78, %c0_79], %106 {strides = array<i32>} : memref<32x384xf32, #tpu.memory_space<vmem>>, vector<1x384xf32>,
    %c0_80 = arith.constant 0 : index
    %c127_81 = arith.constant 127 : index
    %110 = vector.load %arg3[%c0_80, %c127_81] : memref<32x384xf32, #tpu.memory_space<vmem>>, vector<32x1xf32>
    tpu.vector_store %arg3[%c0_80, %c127_81], %107 {strides = array<i32>} : memref<32x384xf32, #tpu.memory_space<vmem>>, vector<32x1xf32>,
    %c0_82 = arith.constant 0 : index
    %c256 = arith.constant 256 : index
    %111 = vector.load %arg3[%c0_82, %c256] : memref<32x384xf32, #tpu.memory_space<vmem>>, vector<32x1xf32>
    tpu.vector_store %arg3[%c0_82, %c256], %107 {strides = array<i32>} : memref<32x384xf32, #tpu.memory_space<vmem>>, vector<32x1xf32>,
    %c8_83 = arith.constant 8 : index
    %c128_84 = arith.constant 128 : index
    %112 = vector.load %arg3[%c8_83, %c128_84] : memref<32x384xf32, #tpu.memory_space<vmem>>, vector<16x128xf32>
    tpu.vector_store %arg3[%c8_83, %c128_84], %105 {strides = array<i32>} : memref<32x384xf32, #tpu.memory_space<vmem>>, vector<16x128xf32>,
    %113 = math.absf %79 : vector<16x128xf32>
    %114 = math.absf %90 : vector<16x128xf32>
    %cst_85 = arith.constant 0.414213568 : f32
    %115 = vector.broadcast %cst_85 : f32 to vector<16x128xf32>
    %116 = arith.mulf %115, %113 : vector<16x128xf32>
    %117 = arith.cmpf ole, %114, %116 : vector<16x128xf32>
    %cst_86 = arith.constant 2.41421366 : f32
    %118 = vector.broadcast %cst_86 : f32 to vector<16x128xf32>
    %119 = arith.mulf %118, %113 : vector<16x128xf32>
    %120 = arith.cmpf oge, %114, %119 : vector<16x128xf32>
    %121 = arith.mulf %79, %90 : vector<16x128xf32>
    %cst_87 = arith.constant 0.000000e+00 : f32
    %122 = vector.broadcast %cst_87 : f32 to vector<16x128xf32>
    %123 = arith.cmpf oge, %121, %122 : vector<16x128xf32>
    %c8_88 = arith.constant 8 : index
    %c129_89 = arith.constant 129 : index
    %124 = vector.load %arg3[%c8_88, %c129_89] : memref<32x384xf32, #tpu.memory_space<vmem>>, vector<16x128xf32>
    %c8_90 = arith.constant 8 : index
    %c127_91 = arith.constant 127 : index
    %125 = vector.load %arg3[%c8_90, %c127_91] : memref<32x384xf32, #tpu.memory_space<vmem>>, vector<16x128xf32>
    %126 = arith.maximumf %124, %125 : vector<16x128xf32>
    %c9_92 = arith.constant 9 : index
    %c128_93 = arith.constant 128 : index
    %127 = vector.load %arg3[%c9_92, %c128_93] : memref<32x384xf32, #tpu.memory_space<vmem>>, vector<16x128xf32>
    %c7_94 = arith.constant 7 : index
    %c128_95 = arith.constant 128 : index
    %128 = vector.load %arg3[%c7_94, %c128_95] : memref<32x384xf32, #tpu.memory_space<vmem>>, vector<16x128xf32>
    %129 = arith.maximumf %127, %128 : vector<16x128xf32>
    %c9_96 = arith.constant 9 : index
    %c129_97 = arith.constant 129 : index
    %130 = vector.load %arg3[%c9_96, %c129_97] : memref<32x384xf32, #tpu.memory_space<vmem>>, vector<16x128xf32>
    %c7_98 = arith.constant 7 : index
    %c127_99 = arith.constant 127 : index
    %131 = vector.load %arg3[%c7_98, %c127_99] : memref<32x384xf32, #tpu.memory_space<vmem>>, vector<16x128xf32>
    %132 = arith.maximumf %130, %131 : vector<16x128xf32>
    %c9_100 = arith.constant 9 : index
    %c127_101 = arith.constant 127 : index
    %133 = vector.load %arg3[%c9_100, %c127_101] : memref<32x384xf32, #tpu.memory_space<vmem>>, vector<16x128xf32>
    %c7_102 = arith.constant 7 : index
    %c129_103 = arith.constant 129 : index
    %134 = vector.load %arg3[%c7_102, %c129_103] : memref<32x384xf32, #tpu.memory_space<vmem>>, vector<16x128xf32>
    %135 = arith.maximumf %133, %134 : vector<16x128xf32>
    %136 = arith.select %123, %132, %135 : vector<16x128xi1>, vector<16x128xf32>
    %137 = arith.select %120, %129, %136 : vector<16x128xi1>, vector<16x128xf32>
    %138 = arith.select %117, %126, %137 : vector<16x128xi1>, vector<16x128xf32>
    %139 = arith.cmpf ogt, %105, %138 : vector<16x128xf32>
    %cst_104 = arith.constant 0.000000e+00 : f32
    %140 = vector.broadcast %cst_104 : f32 to vector<16x128xf32>
    %141 = arith.select %139, %105, %140 : vector<16x128xi1>, vector<16x128xf32>
    %c0_105 = arith.constant 0 : index
    %c0_106 = arith.constant 0 : index
    %c0_107 = arith.constant 0 : index
    %c0_108 = arith.constant 0 : index
    %142 = vector.load %arg2[%c0_105, %c0_106, %c0_107, %c0_108] : memref<1x5x16x128xf32, #tpu.memory_space<vmem>>, vector<1x1x16x128xf32>
    %143 = vector.shape_cast %142 : vector<1x1x16x128xf32> to vector<16x128xf32>
    %144 = vector.shape_cast %141 : vector<16x128xf32> to vector<1x1x16x128xf32>
    tpu.vector_store %arg2[%c0_105, %c0_106, %c0_107, %c0_108], %144 {strides = array<i32>} : memref<1x5x16x128xf32, #tpu.memory_space<vmem>>, vector<1x1x16x128xf32>,
    %c8_109 = arith.constant 8 : index
    %c128_110 = arith.constant 128 : index
    %145 = vector.load %arg3[%c8_109, %c128_110] : memref<32x384xf32, #tpu.memory_space<vmem>>, vector<16x128xf32>
    tpu.vector_store %arg3[%c8_109, %c128_110], %141 {strides = array<i32>} : memref<32x384xf32, #tpu.memory_space<vmem>>, vector<16x128xf32>,
    %c8_111 = arith.constant 8 : index
    %c127_112 = arith.constant 127 : index
    %146 = vector.load %arg3[%c8_111, %c127_112] : memref<32x384xf32, #tpu.memory_space<vmem>>, vector<16x128xf32>
    %c8_113 = arith.constant 8 : index
    %c129_114 = arith.constant 129 : index
    %147 = vector.load %arg3[%c8_113, %c129_114] : memref<32x384xf32, #tpu.memory_space<vmem>>, vector<16x128xf32>
    %148 = arith.maximumf %146, %147 : vector<16x128xf32>
    %149 = arith.maximumf %141, %148 : vector<16x128xf32>
    %c8_115 = arith.constant 8 : index
    %c128_116 = arith.constant 128 : index
    %150 = vector.load %arg3[%c8_115, %c128_116] : memref<32x384xf32, #tpu.memory_space<vmem>>, vector<16x128xf32>
    tpu.vector_store %arg3[%c8_115, %c128_116], %149 {strides = array<i32>} : memref<32x384xf32, #tpu.memory_space<vmem>>, vector<16x128xf32>,
    %c7_117 = arith.constant 7 : index
    %c128_118 = arith.constant 128 : index
    %151 = vector.load %arg3[%c7_117, %c128_118] : memref<32x384xf32, #tpu.memory_space<vmem>>, vector<16x128xf32>
    %c9_119 = arith.constant 9 : index
    %c128_120 = arith.constant 128 : index
    %152 = vector.load %arg3[%c9_119, %c128_120] : memref<32x384xf32, #tpu.memory_space<vmem>>, vector<16x128xf32>
    %153 = arith.maximumf %151, %152 : vector<16x128xf32>
    %154 = arith.maximumf %149, %153 : vector<16x128xf32>
    %c0_121 = arith.constant 0 : index
    %c1_122 = arith.constant 1 : index
    %c0_123 = arith.constant 0 : index
    %c0_124 = arith.constant 0 : index
    %155 = vector.load %arg2[%c0_121, %c1_122, %c0_123, %c0_124] : memref<1x5x16x128xf32, #tpu.memory_space<vmem>>, vector<1x1x16x128xf32>
    %156 = vector.shape_cast %155 : vector<1x1x16x128xf32> to vector<16x128xf32>
    %157 = vector.shape_cast %154 : vector<16x128xf32> to vector<1x1x16x128xf32>
    tpu.vector_store %arg2[%c0_121, %c1_122, %c0_123, %c0_124], %157 {strides = array<i32>} : memref<1x5x16x128xf32, #tpu.memory_space<vmem>>, vector<1x1x16x128xf32>,
    %c8_125 = arith.constant 8 : index
    %c128_126 = arith.constant 128 : index
    %158 = vector.load %arg3[%c8_125, %c128_126] : memref<32x384xf32, #tpu.memory_space<vmem>>, vector<16x128xf32>
    tpu.vector_store %arg3[%c8_125, %c128_126], %154 {strides = array<i32>} : memref<32x384xf32, #tpu.memory_space<vmem>>, vector<16x128xf32>,
    %c8_127 = arith.constant 8 : index
    %c127_128 = arith.constant 127 : index
    %159 = vector.load %arg3[%c8_127, %c127_128] : memref<32x384xf32, #tpu.memory_space<vmem>>, vector<16x128xf32>
    %c8_129 = arith.constant 8 : index
    %c129_130 = arith.constant 129 : index
    %160 = vector.load %arg3[%c8_129, %c129_130] : memref<32x384xf32, #tpu.memory_space<vmem>>, vector<16x128xf32>
    %161 = arith.maximumf %159, %160 : vector<16x128xf32>
    %162 = arith.maximumf %154, %161 : vector<16x128xf32>
    %c8_131 = arith.constant 8 : index
    %c128_132 = arith.constant 128 : index
    %163 = vector.load %arg3[%c8_131, %c128_132] : memref<32x384xf32, #tpu.memory_space<vmem>>, vector<16x128xf32>
    tpu.vector_store %arg3[%c8_131, %c128_132], %162 {strides = array<i32>} : memref<32x384xf32, #tpu.memory_space<vmem>>, vector<16x128xf32>,
    %c7_133 = arith.constant 7 : index
    %c128_134 = arith.constant 128 : index
    %164 = vector.load %arg3[%c7_133, %c128_134] : memref<32x384xf32, #tpu.memory_space<vmem>>, vector<16x128xf32>
    %c9_135 = arith.constant 9 : index
    %c128_136 = arith.constant 128 : index
    %165 = vector.load %arg3[%c9_135, %c128_136] : memref<32x384xf32, #tpu.memory_space<vmem>>, vector<16x128xf32>
    %166 = arith.maximumf %164, %165 : vector<16x128xf32>
    %167 = arith.maximumf %162, %166 : vector<16x128xf32>
    %c0_137 = arith.constant 0 : index
    %c2_138 = arith.constant 2 : index
    %c0_139 = arith.constant 0 : index
    %c0_140 = arith.constant 0 : index
    %168 = vector.load %arg2[%c0_137, %c2_138, %c0_139, %c0_140] : memref<1x5x16x128xf32, #tpu.memory_space<vmem>>, vector<1x1x16x128xf32>
    %169 = vector.shape_cast %168 : vector<1x1x16x128xf32> to vector<16x128xf32>
    %170 = vector.shape_cast %167 : vector<16x128xf32> to vector<1x1x16x128xf32>
    tpu.vector_store %arg2[%c0_137, %c2_138, %c0_139, %c0_140], %170 {strides = array<i32>} : memref<1x5x16x128xf32, #tpu.memory_space<vmem>>, vector<1x1x16x128xf32>,
    %c8_141 = arith.constant 8 : index
    %c128_142 = arith.constant 128 : index
    %171 = vector.load %arg3[%c8_141, %c128_142] : memref<32x384xf32, #tpu.memory_space<vmem>>, vector<16x128xf32>
    tpu.vector_store %arg3[%c8_141, %c128_142], %167 {strides = array<i32>} : memref<32x384xf32, #tpu.memory_space<vmem>>, vector<16x128xf32>,
    %c8_143 = arith.constant 8 : index
    %c127_144 = arith.constant 127 : index
    %172 = vector.load %arg3[%c8_143, %c127_144] : memref<32x384xf32, #tpu.memory_space<vmem>>, vector<16x128xf32>
    %c8_145 = arith.constant 8 : index
    %c129_146 = arith.constant 129 : index
    %173 = vector.load %arg3[%c8_145, %c129_146] : memref<32x384xf32, #tpu.memory_space<vmem>>, vector<16x128xf32>
    %174 = arith.maximumf %172, %173 : vector<16x128xf32>
    %175 = arith.maximumf %167, %174 : vector<16x128xf32>
    %c8_147 = arith.constant 8 : index
    %c128_148 = arith.constant 128 : index
    %176 = vector.load %arg3[%c8_147, %c128_148] : memref<32x384xf32, #tpu.memory_space<vmem>>, vector<16x128xf32>
    tpu.vector_store %arg3[%c8_147, %c128_148], %175 {strides = array<i32>} : memref<32x384xf32, #tpu.memory_space<vmem>>, vector<16x128xf32>,
    %c7_149 = arith.constant 7 : index
    %c128_150 = arith.constant 128 : index
    %177 = vector.load %arg3[%c7_149, %c128_150] : memref<32x384xf32, #tpu.memory_space<vmem>>, vector<16x128xf32>
    %c9_151 = arith.constant 9 : index
    %c128_152 = arith.constant 128 : index
    %178 = vector.load %arg3[%c9_151, %c128_152] : memref<32x384xf32, #tpu.memory_space<vmem>>, vector<16x128xf32>
    %179 = arith.maximumf %177, %178 : vector<16x128xf32>
    %180 = arith.maximumf %175, %179 : vector<16x128xf32>
    %c0_153 = arith.constant 0 : index
    %c3 = arith.constant 3 : index
    %c0_154 = arith.constant 0 : index
    %c0_155 = arith.constant 0 : index
    %181 = vector.load %arg2[%c0_153, %c3, %c0_154, %c0_155] : memref<1x5x16x128xf32, #tpu.memory_space<vmem>>, vector<1x1x16x128xf32>
    %182 = vector.shape_cast %181 : vector<1x1x16x128xf32> to vector<16x128xf32>
    %183 = vector.shape_cast %180 : vector<16x128xf32> to vector<1x1x16x128xf32>
    tpu.vector_store %arg2[%c0_153, %c3, %c0_154, %c0_155], %183 {strides = array<i32>} : memref<1x5x16x128xf32, #tpu.memory_space<vmem>>, vector<1x1x16x128xf32>,
    %c8_156 = arith.constant 8 : index
    %c128_157 = arith.constant 128 : index
    %184 = vector.load %arg3[%c8_156, %c128_157] : memref<32x384xf32, #tpu.memory_space<vmem>>, vector<16x128xf32>
    tpu.vector_store %arg3[%c8_156, %c128_157], %180 {strides = array<i32>} : memref<32x384xf32, #tpu.memory_space<vmem>>, vector<16x128xf32>,
    %c8_158 = arith.constant 8 : index
    %c127_159 = arith.constant 127 : index
    %185 = vector.load %arg3[%c8_158, %c127_159] : memref<32x384xf32, #tpu.memory_space<vmem>>, vector<16x128xf32>
    %c8_160 = arith.constant 8 : index
    %c129_161 = arith.constant 129 : index
    %186 = vector.load %arg3[%c8_160, %c129_161] : memref<32x384xf32, #tpu.memory_space<vmem>>, vector<16x128xf32>
    %187 = arith.maximumf %185, %186 : vector<16x128xf32>
    %188 = arith.maximumf %180, %187 : vector<16x128xf32>
    %c8_162 = arith.constant 8 : index
    %c128_163 = arith.constant 128 : index
    %189 = vector.load %arg3[%c8_162, %c128_163] : memref<32x384xf32, #tpu.memory_space<vmem>>, vector<16x128xf32>
    tpu.vector_store %arg3[%c8_162, %c128_163], %188 {strides = array<i32>} : memref<32x384xf32, #tpu.memory_space<vmem>>, vector<16x128xf32>,
    %c7_164 = arith.constant 7 : index
    %c128_165 = arith.constant 128 : index
    %190 = vector.load %arg3[%c7_164, %c128_165] : memref<32x384xf32, #tpu.memory_space<vmem>>, vector<16x128xf32>
    %c9_166 = arith.constant 9 : index
    %c128_167 = arith.constant 128 : index
    %191 = vector.load %arg3[%c9_166, %c128_167] : memref<32x384xf32, #tpu.memory_space<vmem>>, vector<16x128xf32>
    %192 = arith.maximumf %190, %191 : vector<16x128xf32>
    %193 = arith.maximumf %188, %192 : vector<16x128xf32>
    %c0_168 = arith.constant 0 : index
    %c4 = arith.constant 4 : index
    %c0_169 = arith.constant 0 : index
    %c0_170 = arith.constant 0 : index
    %194 = vector.load %arg2[%c0_168, %c4, %c0_169, %c0_170] : memref<1x5x16x128xf32, #tpu.memory_space<vmem>>, vector<1x1x16x128xf32>
    %195 = vector.shape_cast %194 : vector<1x1x16x128xf32> to vector<16x128xf32>
    %196 = vector.shape_cast %193 : vector<16x128xf32> to vector<1x1x16x128xf32>
    tpu.vector_store %arg2[%c0_168, %c4, %c0_169, %c0_170], %196 {strides = array<i32>} : memref<1x5x16x128xf32, #tpu.memory_space<vmem>>, vector<1x1x16x128xf32>,
    return
  }
  func.func @transform_0(%arg0: i32) -> (i32, i32, i32, i32) {
    %c0_i32 = arith.constant 0 : i32
    %c0_i32_0 = arith.constant 0 : i32
    %c0_i32_1 = arith.constant 0 : i32
    %c0_i32_2 = arith.constant 0 : i32
    return %arg0, %c0_i32, %c0_i32_0, %c0_i32_1 : i32, i32, i32, i32
  }
  func.func @transform_1(%arg0: i32) -> (i32, i32, i32, i32) {
    %c0_i32 = arith.constant 0 : i32
    %c0_i32_0 = arith.constant 0 : i32
    %c0_i32_1 = arith.constant 0 : i32
    %c0_i32_2 = arith.constant 0 : i32
    return %arg0, %c0_i32, %c0_i32_0, %c0_i32_1 : i32, i32, i32, i32
  }
}

</mosaic_0001>

<bundles_post_ra>
// kernel: tpu_custom_call.1
= control target key start
LH: loop header
LB: loop body
LE: loop exit
PB: predicated region body
PF: predicated region fallthrough
CT: control target
= control target key end

     0   :  { %6 = vsyncpa [#allocation4], 0  ;;  %s2310_s0 = inlined_call_operand.hbm [shape: f32[2,3,16,128], index: 0, kind: input, shape index: {}]   ;;  %s2311_s1 = inlined_call_operand.hbm [shape: f32[2,5,16,128], index: 1, kind: output, shape index: {}]  }
   0x1   :  { %8 = vsyncpa [#allocation4 + $0x1], 0 }
   0x2   :  { %9 = vsyncpa [#allocation5], 0 }
   0x3   :  { %11 = vsyncpa [#allocation5 + $0x1], 0  ;;  %s1740_s6 = smov 0   ;;  %s1742_s7 = smov 0  }
   0x4   :  { %s1744_s8 = smov 0   ;;  %s1746_s9 = smov 0  }
   0x5 LB: > { %s1761_s10 = sadd.s32 4294967295, %s1717_s9   ;;  %s1531_s11 = sadd.s32 4294967294, %s1717_s9   ;;  %s1717_s9 = sphi %s1746_s9, %s2319_s9   ;;  %s1713_s8 = sphi %s1744_s8, %s2318_s8   ;;  %s1709_s7 = sphi %s1742_s7, %s2317_s7   ;;  %s1705_s6 = sphi %s1740_s6, %s2316_s6  }
   0x6   : > { %s1765_s12 = sadd.s32 1, %s1717_s9   ;;  %s24_s13 = sadd.s32 1, %s1713_s8 }
   0x7   : > { %s21_s14 = ssub.s32 %s1717_s9, %s1765_s12  ;;  %p31_p0 = scmp.ne.s32.totalorder %s1713_s8, %s1709_s7 }
   0x8   : > { %p22_p1 = scmp.eq.s32.totalorder %s21_s14, 0  ;;  %p32_p2 = scmp.eq.s32.totalorder %s1717_s9, 0 }
   0x9   : > { %p37_p3 = scmp.ne.s32.totalorder %s1709_s7, %s1705_s6  ;;  %p38_p4 = scmp.eq.s32.totalorder %s1761_s10, 0 }
   0xa   : > { %s1777_s15 = scalar_select %p22_p1, %s1713_s8, %s24_s13  }
   0xb   : > { %p33_p5 = por %p32_p2, %p31_p0  ;;  %p1779_p6 = por %p38_p4, %p37_p3 }
   0xc   : > { %p61_p7 = scmp.eq.s32.totalorder %s1761_s10, 1  ;;  %p67_p8 = scmp.eq.s32.totalorder %s1531_s11, 1 }
   0xd   : > { %p1533_p9 = scmp.ge.s32.totalorder %s1717_s9, 2  ;;  %p1568_p10 = scmp.lt.s32.totalorder %s1717_s9, 2 }
   0xe   : > { %p1786_p11 = por %p61_p7, %p31_p0  ;;  %p1790_p12 = por %p67_p8, %p37_p3 }
   0xf   : > { %s87_s19 = sand.u32 1, %s1713_s8   ;;  %s1552_s20 = smul.u32 48, %s1717_s9 }
  0x10   : > { %s1551_s21 = smul.u32 48, %s87_s19  ;;  %p1799_p13 = pnand %p1568_p10, %p33_p5 }
  0x11   : > { %s96_s24 = scalar_lea.hbm %s2310_s0, %s1552_s20  ;;  %s88_s29 = scalar_lea.sflag [#allocation4], %s87_s19 }
  0x12   : > { %s97_s26 = sshll.u32 %s96_s24, 4  ;;  %s91_s27 = scalar_lea.vmem [#allocation3], %s1551_s21  ;;  %s98_s26 = int_to_ptr.hbm [resolvable:$true] %s97_s26 }
  0x13   : > { %s99_s28 = sshll.u32 %s91_s27, 4  ;;  %s1621_s30 = sshra.s32 %s98_s26, 4  ;;  %s100_s28 = int_to_ptr.vmem [resolvable:$true] %s99_s28  ;;  %s1622_s30 = int_to_ptr.hbm [resolvable:$true] %s1621_s30 }
  0x14   : > { %s1623_s2 = scalar_lea.hbm %s1622_s30, 48  ;;  %p1625_p1 = pneg %p1799_p13 }
  0x15   : > { %p1624_p0 = scmp.ne.s32.totalorder %s1622_s30, %s1623_s2  ;;  %s1628_s5 = scalar_lea.hbm %s2310_s0, 96 }
  0x16   : > { %p1629_p4 = scmp.lt.s32.totalorder %s1622_s30, %s2310_s0  ;;  %p1630_p5 = scmp.lt.s32.totalorder %s1628_s5, %s1623_s2 }
  0x17   : > { %p1626_p2 = pnand %p1625_p1, %p1624_p0 }
  0x18   : > { %p1631_p7 = por %p1630_p5, %p1629_p4 }
  0x19   : > { %p1627_p3 = pneg %p1626_p2 }
  0x1b   : > { %p1632_p8 = pnand %p1631_p7, %p1627_p3 }
  0x1d   : > { %1635 = shalt.err (!%p1632_p8)
}
  0x1e   : > { %s1719_s14 = smov 128   ;;  %s1720_s19 = smov 8  }
  0x1f   : > { %1563 = dma.hbm_to_vmem [thread:$0]  (!%p1799_p13), %s98_s26, 768, %s100_s28, %s88_s29, %s1719_s14, %s1719_s14, %s1720_s19  }
  0x20   : > { %p1535_p10 = scmp.ge.s32.totalorder %s1717_s9, 1  ;;  %p107_p0 = scmp.lt.s32.totalorder %s1717_s9, 3 }
  0x22   : > { %p108_p1 = pnand %p1535_p10, %p107_p0 }
  0x23   : > { %s1816_s20 = sand.u32 (!%p108_p1), 1, %s1709_s7  }
  0x24   : > { %111 = sbr.rel (%p108_p1) target bundleno = 2605 (0xa2d), region = 24  ;;  %s114_s22 = scalar_lea.sflag (!%p108_p1), [#allocation4], %s1816_s20 }
  0x25   : > { %s1553_s21 = smul.u32 (!%p108_p1), 48, %s1816_s20 }
  0x27   : > { %s117_s23 = scalar_lea.vmem (!%p108_p1), [#allocation3], %s1553_s21 }
  0x29   : > { %1696 = dma.done.wait (%p1779_p6), %s114_s22, 768  }
  0x2a   : > { %1698 = vsyncadd (%p1779_p6), %s114_s22, 4294966528  ;;  %v1536_v0 = vld [vmem:[%s117_s23 + $0x20] sm:$0xff]  ;;  %v1537_v1 = vld [vmem:[%s117_s23 + $0x28] sm:$0xff]  ;;  %vm201_vm0 = vcmask 1045504   ;;  %vm180_vm1 = vcmask 1043456   ;;  %vm219_vm2 = vcmask 1046528  }
  0x2b   : > { %v1538_v2 = vld [vmem:[%s117_s23 + $0x10] sm:$0xff]  ;;  %v140_v3 = vmul.f32 0.299, %v1536_v0  ;;  %v141_v4 = vmul.f32 0.299, %v1537_v1  ;;  %v1539_v5 = vld [vmem:[%s117_s23 + $0x18] sm:$0xff] }
  0x2c   : > { %v149_v6 = vld [vmem:[%s117_s23] sm:$0xff]  ;;  %v145_v7 = vmul.f32 0.587, %v1538_v2  ;;  %v146_v8 = vmul.f32 0.587, %v1539_v5  ;;  %v150_v9 = vld [vmem:[%s117_s23 + $0x8] sm:$0xff] }
  0x2d   : > { %v151_v10 = vmul.f32 0.114, %v149_v6  ;;  %v152_v11 = vmul.f32 0.114, %v150_v9  ;;  %vm247_vm3 = vcmask 1041408   ;;  %s1721_s16 = smov 2  }
  0x2e   : > { %v147_v12 = vadd.f32 %v145_v7, %v140_v3  ;;  %v148_v13 = vadd.f32 %v146_v8, %v141_v4  ;;  %s1722_s24 = smov 124   ;;  %s1723_s25 = smov 4   ;;  %v1842_v7 = vld [vmem:[#allocation2 + $0x40] sm:$0xff]  ;;  %v1846_v8 = vld [vmem:[#allocation2 + $0x28] sm:$0xff]  ;;  %vm281_vm4 = vcmask 138368   ;;  %vm263_vm5 = vcmask 1040368  }
  0x2f   : > { %s1724_s26 = smov 126   ;;  %vm290_vm6 = vcmask 146568   ;;  %vm272_vm7 = vcmask 1048568   ;;  %vm334_vm8 = vcmask 1031168   ;;  %s1725_s27 = smov 127   ;;  %vm311_vm9 = vcmask 1014784  }
  0x30   : > { %v153_v14 = vadd.f32 %v151_v10, %v147_v12  ;;  %v154_v15 = vadd.f32 %v152_v11, %v148_v13  ;;  %vm361_vm10 = vcmask 1039360   ;;  %vm405_vm11 = vcmask 15360   ;;  %s1726_s28 = smov 1   ;;  %s1554_s29 = smul.u32 80, %s1816_s20 }
  0x31   : > { %vm494_vm12 = vcmask 1040384   ;;  %vm749_vm13 = vcmask 7168   ;;  %s1555_s2 = smul.u32 80, %s1761_s10  ;;  %s1443_s13 = scalar_lea.sflag [#allocation5], %s1816_s20 }
  0x32   : > { %155 = vst [vmem:[#allocation2 + $0x20] sm:$0xff] %v153_v14  ;;  %v158_v16 = vrot.slane %v153_v14, 2  ;;  %v161_v17 = vrot.slane %v153_v14, 1  ;;  %v165_v18 = vrot.slane %v154_v15, 6  ;;  %v168_v19 = vrot.slane %v154_v15, 5  ;;  %s2183_s30 = scalar_lea.vmem [#allocation6], %s1554_s29 }
  0x33   : > { %156 = vst [vmem:[#allocation2 + $0x38] sm:$0xff] %v154_v15  ;;  %v203_v20 = vrot.slane %v154_v15, 2  ;;  %v182_v22 = vrot.slane %v154_v15, 4  ;;  %v231_v26 = vmul.f32 0.40261996, %v153_v14  ;;  %s1454_s5 = scalar_lea.hbm %s2311_s1, %s1555_s2  ;;  %s1455_s10 = sshll.u32 %s2183_s30, 4  ;;  %s1456_s10 = int_to_ptr.vmem [resolvable:$true] %s1455_s10 }
  0x34   : > { %160 = vst [vmem:[#allocation2 + $0xe] sm:$0x1] %v158_v16  ;;  %v232_v28 = vmul.f32 0.40261996, %v154_v15  ;;  %s1457_s11 = sshll.u32 %s1454_s5, 4  ;;  %s1671_s23 = scalar_lea.hbm %s2311_s1, 160  ;;  %s1458_s11 = int_to_ptr.hbm [resolvable:$true] %s1457_s11 }
  0x35   : > { %163 = vst [vmem:[#allocation2 + $0xf] sm:$0x1] %v161_v17  ;;  %v235_v52 = vrot.slane %v231_v26, 2  ;;  %s1665_s14 = sshra.s32 %s1458_s11, 4  ;;  %s1666_s14 = int_to_ptr.hbm [resolvable:$true] %s1665_s14 }
  0x36   : > { %167 = vst [vmem:[#allocation2 + $0x50] sm:$0x1] %v165_v18  ;;  %v236_v53 = vrot.slane %v232_v28, 2  ;;  %s1667_s19 = scalar_lea.hbm %s1666_s14, 80  ;;  %p1672_p3 = scmp.lt.s32.totalorder %s1666_s14, %s2311_s1 }
  0x37   : > { %170 = vst [vmem:[#allocation2 + $0x51] sm:$0x1] %v168_v19  ;;  %p1668_p6 = scmp.ne.s32.totalorder %s1666_s14, %s1667_s19  ;;  %p1673_p4 = scmp.lt.s32.totalorder %s1671_s23, %s1667_s19 }
  0x38   : > { %v237_v61 = vsel %vm201_vm0, %v235_v52, %v236_v53 }
  0x39   : > { %v174_v21 = vld [vmem:[#allocation2 + $0x20] sm:$0xfc]  ;;  %p1669_p13 = pnand %p1668_p6, %p1786_p11  ;;  %p1674_p5 = por %p1673_p4, %p1672_p3 }
  0x3a   : > { %v197_v23 = vld [vmem:[#allocation2 + $0x20] sm:$0xfe]  ;;  %v181_v24 = vrot.slane %v174_v21, 4  ;;  %v196_v37 = vld [vmem:[#allocation2 + $0x38] sm:$0x7f] }
  0x3b   : > { %v202_v25 = vrot.slane %v197_v23, 2  ;;  %v173_v39 = vld [vmem:[#allocation2 + $0x38] sm:$0x3f]  ;;  %p1670_p2 = pneg %p1669_p13 }
  0x3c   : > { %v171_v29 = vld [vmem:[#allocation2 + $0x8] sm:$0xc0]  ;;  %v183_v31 = vsel %vm180_vm1, %v181_v24, %v182_v22 }
  0x3d   : > { %v204_v27 = vsel %vm201_vm0, %v202_v25, %v203_v20  ;;  %v195_v30 = vld [vmem:[#allocation2 + $0x8] sm:$0x80]  ;;  %v198_v32 = vld [vmem:[#allocation2 + $0x50] sm:$0x1]  ;;  %v189_v34 = vadd.f32 %v181_v24, %v171_v29  ;;  %v190_v42 = vadd.f32 %v183_v31, %v153_v14  ;;  %p1675_p7 = pnand %p1674_p5, %p1670_p2 }
  0x3e   : > { %v211_v33 = vadd.f32 %v204_v27, %v153_v14  ;;  %v210_v35 = vadd.f32 %v202_v25, %v195_v30  ;;  %v176_v36 = vld [vmem:[#allocation2 + $0x50] sm:$0x3]  ;;  %v205_v38 = vrot.slane %v198_v32, 2 }
  0x3f   : > { %v184_v40 = vrot.slane %v176_v36, 4  ;;  %v192_v48 = vmul.f32 0.054488685, %v189_v34  ;;  %v193_v54 = vmul.f32 0.054488685, %v190_v42 }
  0x40   : > { %v214_v41 = vmul.f32 0.24420135, %v211_v33  ;;  %v206_v43 = vsel %vm201_vm0, %v203_v20, %v205_v38  ;;  %v213_v44 = vmul.f32 0.24420135, %v210_v35 }
  0x41   : > { %v185_v45 = vsel %vm180_vm1, %v182_v22, %v184_v40  ;;  %v212_v46 = vadd.f32 %v206_v43, %v196_v37 }
  0x42   : > { %v221_v47 = vrot.slane %v214_v41, 1  ;;  %v191_v49 = vadd.f32 %v185_v45, %v173_v39  ;;  %v220_v50 = vrot.slane %v213_v44, 1 }
  0x43   : > { %v215_v51 = vmul.f32 0.24420135, %v212_v46 }
  0x44   : > { %v194_v55 = vmul.f32 0.054488685, %v191_v49  ;;  %v222_v56 = vsel %vm219_vm2, %v220_v50, %v221_v47 }
  0x45   : > { %v223_v57 = vrot.slane %v215_v51, 1  ;;  %v228_v58 = vadd.f32 %v222_v56, %v192_v48 }
  0x47   : > { %v224_v59 = vsel %vm219_vm2, %v221_v47, %v223_v57  ;;  %v230_v60 = vadd.f32 %v223_v57, %v194_v55  ;;  %v1831_v62 = vadd.f32 %v235_v52, %v228_v58 }
  0x48   : > { %v229_v63 = vadd.f32 %v224_v59, %v193_v54 }
  0x49   : > { %v243_v0 = vadd.f32 %v236_v53, %v230_v60  ;;  %v248_v2 = vrot.slane %v1831_v62, 6  ;;  %v372_v38 = vmul.f32 0.40261996, %v1831_v62 }
  0x4a   : > { %v242_v1 = vadd.f32 %v237_v61, %v229_v63 }
  0x4b   : > { %v251_v3 = vrot.slane %v243_v0, 6  ;;  %v374_v27 = vmul.f32 0.40261996, %v243_v0  ;;  %v378_v41 = vrot.slane %v372_v38, 6 }
  0x4c   : > { %v249_v4 = vrot.slane %v242_v1, 6  ;;  %v373_v26 = vmul.f32 0.40261996, %v242_v1 }
  0x4d   : > { %v381_v30 = vrot.slane %v374_v27, 6 }
  0x4e   : > { %v252_v5 = vsel %vm247_vm3, %v249_v4, %v251_v3  ;;  %v250_v6 = vsel %vm247_vm3, %v248_v2, %v249_v4  ;;  %v379_v29 = vrot.slane %v373_v26, 6 }
  0x4f   : > { %277 = vrot.lane.b32.xlu0 %v252_v5, %s1721_s16  ;;  %256 = vst [vmem:[#allocation2 + $0x38] sm:$0xff] %v252_v5  ;;  %275 = vrot.lane.b32.xlu1 %v250_v6, %s1721_s16 }
  0x50   : > { %255 = vst [vmem:[#allocation2 + $0x20] sm:$0xff] %v250_v6  ;;  %259 = vrot.lane.b32.xlu2 %v252_v5, %s1722_s24  ;;  %v382_v31 = vsel %vm247_vm3, %v379_v29, %v381_v30  ;;  %v380_v42 = vsel %vm247_vm3, %v378_v41, %v379_v29 }
  0x57   : > { %286 = vrot.lane.b32.xlu0 %v252_v5, %s1723_s25  ;;  %284 = vrot.lane.b32.xlu1 %v250_v6, %s1723_s25 }
  0x58   : > { %268 = vrot.lane.b32.xlu2 %v252_v5, %s1724_s26 }
  0x5f   : > { %257 = vrot.lane.b32.xlu0 %v250_v6, %s1722_s24  ;;  %266 = vrot.lane.b32.xlu1 %v250_v6, %s1724_s26 }
  0x67   : > { %332 = vrot.lane.b32.xlu0 %v1842_v7, %s1724_s26 }
  0x6f   : > { %305 = vrot.lane.b32.xlu0 %v1846_v8, %s1722_s24 }
  0xaa   : > { %v260_v11 = vpop.permute.xlu2 %259 }
  0xab   : > { %265 = vst.msk [vmem:[#allocation2 + $0x30] sm:$0xff] %vm263_vm5, %v260_v11 }
  0xb2   : > { %v269_v14 = vpop.permute.xlu2 %268 }
  0xb3   : > { %274 = vst.msk [vmem:[#allocation2 + $0x30] sm:$0xff] %vm272_vm7, %v269_v14 }
  0xba   : > { %v295_v19 = vld [vmem:[#allocation2 + $0x30] sm:$0xff] }
  0xc1   : > { %v278_v9 = vpop.permute.xlu0 %277  ;;  %v276_v10 = vpop.permute.xlu1 %275 }
  0xc2   : > { %283 = vst.msk [vmem:[#allocation2 + $0x38] sm:$0xff] %vm281_vm4, %v278_v9 }
  0xc3   : > { %282 = vst.msk [vmem:[#allocation2 + $0x20] sm:$0xff] %vm281_vm4, %v276_v10 }
  0xc9   : > { %v287_v12 = vpop.permute.xlu0 %286  ;;  %v285_v13 = vpop.permute.xlu1 %284 }
  0xca   : > { %292 = vst.msk [vmem:[#allocation2 + $0x38] sm:$0xff] %vm290_vm6, %v287_v12 }
  0xcb   : > { %291 = vst.msk [vmem:[#allocation2 + $0x20] sm:$0xff] %vm290_vm6, %v285_v13 }
  0xd1   : > { %v296_v15 = vld [vmem:[#allocation2 + $0x38] sm:$0xff]  ;;  %v258_v16 = vpop.permute.xlu0 %257  ;;  %v267_v18 = vpop.permute.xlu1 %266 }
  0xd2   : > { %330 = vrot.lane.b32.xlu2 %v296_v15, %s1724_s26  ;;  %307 = vrot.lane.b32.xlu0 %v296_v15, %s1722_s24  ;;  %v1856_v17 = vld [vmem:[#allocation2 + $0x20] sm:$0xff]  ;;  %264 = vst.msk [vmem:[#allocation2 + $0x18] sm:$0xff] %vm263_vm5, %v258_v16 }
  0xd3   : > { %326 = vrot.lane.b32.xlu1 %v1856_v17, %s1724_s26  ;;  %273 = vst.msk [vmem:[#allocation2 + $0x18] sm:$0xff] %vm272_vm7, %v267_v18 }
  0xd9   : > { %v333_v20 = vpop.permute.xlu0 %332 }
  0xda   : > { %328 = vrot.lane.b32.xlu2 %v1846_v8, %s1724_s26  ;;  %v293_v33 = vld [vmem:[#allocation2 + $0x18] sm:$0xff] }
  0xdb   : > { %309 = vrot.lane.b32.xlu1 %v1842_v7, %s1722_s24 }
  0xe1   : > { %v306_v43 = vpop.permute.xlu0 %305 }
  0xe2   : > { %303 = vrot.lane.b32.xlu2 %v1856_v17, %s1722_s24 }
 0x12c   : > { %v331_v21 = vpop.permute.xlu2 %330 }
 0x12d   : > { %v343_v22 = vadd.f32 %v331_v21, %v295_v19  ;;  %v336_v23 = vsel %vm334_vm8, %v331_v21, %v333_v20 }
 0x12e   : > { %v344_v24 = vadd.f32 %v336_v23, %v296_v15 }
 0x12f   : > { %v347_v25 = vmul.f32 0.24420135, %v343_v22 }
 0x130   : > { %v348_v28 = vmul.f32 0.24420135, %v344_v24 }
 0x131   : > { %357 = vrot.lane.b32.xlu1 %v347_v25, %s1725_s27 }
 0x132   : > { %359 = vrot.lane.b32.xlu2 %v348_v28, %s1725_s27 }
 0x134   : > { %v329_v32 = vpop.permute.xlu2 %328 }
 0x13a   : > { %385 = vrot.lane.b32.xlu2 %v382_v31, %s1724_s26 }
 0x13c   : > { %v304_v44 = vpop.permute.xlu2 %303 }
 0x13d   : > { %v312_v61 = vsel %vm311_vm9, %v304_v44, %v306_v43  ;;  %v318_v63 = vadd.f32 %v304_v44, %v293_v33 }
 0x13e   : > { %v319_v0 = vadd.f32 %v312_v61, %v1856_v17 }
 0x13f   : > { %v322_v3 = vmul.f32 0.054488685, %v318_v63 }
 0x140   : > { %v323_v4 = vmul.f32 0.054488685, %v319_v0 }
 0x144   : > { %v308_v46 = vpop.permute.xlu0 %307 }
 0x145   : > { %v327_v34 = vpop.permute.xlu1 %326  ;;  %v320_v54 = vadd.f32 %v308_v46, %v295_v19 }
 0x146   : > { %v335_v35 = vsel %vm334_vm8, %v327_v34, %v329_v32  ;;  %v341_v36 = vadd.f32 %v327_v34, %v293_v33 }
 0x147   : > { %v342_v37 = vadd.f32 %v335_v35, %v1856_v17  ;;  %v324_v55 = vmul.f32 0.054488685, %v320_v54 }
 0x148   : > { %v345_v39 = vmul.f32 0.24420135, %v341_v36 }
 0x149   : > { %v346_v40 = vmul.f32 0.24420135, %v342_v37 }
 0x14a   : > { %353 = vrot.lane.b32.xlu0 %v345_v39, %s1725_s27 }
 0x14b   : > { %355 = vrot.lane.b32.xlu1 %v346_v40, %s1725_s27 }
 0x14d   : > { %v310_v45 = vpop.permute.xlu1 %309 }
 0x14e   : > { %v313_v47 = vsel %vm311_vm9, %v308_v46, %v310_v45 }
 0x14f   : > { %v321_v49 = vadd.f32 %v313_v47, %v296_v15 }
 0x151   : > { %v325_v50 = vmul.f32 0.054488685, %v321_v49 }
 0x152   : > { %383 = vrot.lane.b32.xlu0 %v380_v42, %s1724_s26 }
 0x18c   : > { %v360_v48 = vpop.permute.xlu2 %359 }
 0x18d   : > { %v371_v51 = vadd.f32 %v360_v48, %v325_v50 }
 0x194   : > { %v386_v52 = vpop.permute.xlu2 %385 }
 0x195   : > { %v392_v53 = vadd.f32 %v386_v52, %v371_v51 }
 0x197   : > { %403 = vrot.lane.b32.xlu1 %v392_v53, %s1721_s16  ;;  %v414_v60 = vrot.slane %v392_v53, 7  ;;  %v431_v19 = vmul.f32 2.0, %v392_v53 }
 0x199   : > { %v440_v20 = vrot.slane %v431_v19, 1 }
 0x1a3   : > { %v358_v56 = vpop.permute.xlu1 %357 }
 0x1a4   : > { %v363_v57 = vsel %vm361_vm10, %v358_v56, %v360_v48 }
 0x1a5   : > { %v370_v58 = vadd.f32 %v363_v57, %v324_v55 }
 0x1a7   : > { %v391_v59 = vadd.f32 %v386_v52, %v370_v58 }
 0x1a9   : > { %401 = vrot.lane.b32.xlu0 %v391_v59, %s1721_s16  ;;  %v430_v12 = vmul.f32 2.0, %v391_v59  ;;  %v413_v17 = vrot.slane %v391_v59, 7 }
 0x1ab   : > { %v438_v15 = vrot.slane %v430_v12, 1 }
 0x1b1   : > { %417 = vrot.lane.b32.xlu0 %v414_v60, %s1721_s16 }
 0x1bc   : > { %v354_v62 = vpop.permute.xlu0 %353 }
 0x1bd   : > { %v356_v1 = vpop.permute.xlu1 %355 }
 0x1be   : > { %v362_v2 = vsel %vm361_vm10, %v354_v62, %v356_v1  ;;  %v369_v6 = vadd.f32 %v356_v1, %v323_v4 }
 0x1bf   : > { %v368_v5 = vadd.f32 %v362_v2, %v322_v3 }
 0x1c4   : > { %v384_v9 = vpop.permute.xlu0 %383 }
 0x1c5   : > { %v389_v10 = vadd.f32 %v384_v9, %v368_v5  ;;  %v390_v11 = vadd.f32 %v384_v9, %v369_v6 }
 0x1c7   : > { %v428_v13 = vmul.f32 2.0, %v389_v10  ;;  %399 = vrot.lane.b32.xlu2 %v390_v11, %s1721_s16  ;;  %397 = vrot.lane.b32.xlu1 %v389_v10, %s1721_s16  ;;  %v429_v18 = vmul.f32 2.0, %v390_v11 }
 0x1c9   : > { %v436_v14 = vrot.slane %v428_v13, 1  ;;  %v437_v21 = vrot.slane %v429_v18, 1 }
 0x1cb   : > { %v439_v16 = vsel %vm219_vm2, %v436_v14, %v438_v15  ;;  %v441_v22 = vsel %vm219_vm2, %v437_v21, %v440_v20 }
 0x1cc   : > { %446 = vrot.lane.b32.xlu0 %v439_v16, %s1721_s16 }
 0x1cf   : > { %415 = vrot.lane.b32.xlu2 %v413_v17, %s1721_s16  ;;  %442 = vrot.lane.b32.xlu1 %v436_v14, %s1721_s16 }
 0x1d4   : > { %452 = vrot.lane.b32.xlu0 %v440_v20, %s1721_s16 }
 0x1d7   : > { %444 = vrot.lane.b32.xlu2 %v437_v21, %s1721_s16  ;;  %448 = vrot.lane.b32.xlu1 %v441_v22, %s1721_s16 }
 0x1df   : > { %450 = vrot.lane.b32.xlu2 %v438_v15, %s1721_s16 }
 0x209   : > { %v404_v23 = vpop.permute.xlu1 %403 }
 0x21b   : > { %v402_v24 = vpop.permute.xlu0 %401 }
 0x21c   : > { %v407_v25 = vsel %vm405_vm11, %v402_v24, %v404_v23 }
 0x21d   : > { %411 = vst [vmem:[#allocation2 + $0x38] sm:$0xff] %v407_v25  ;;  %v467_v54 = vrot.slane %v407_v25, 2 }
 0x221   : > { %v400_v26 = vpop.permute.xlu2 %399 }
 0x223   : > { %v418_v27 = vpop.permute.xlu0 %417 }
 0x224   : > { %v424_v33 = vld [vmem:[#allocation2 + $0x38] sm:$0x7f] }
 0x225   : > { %v483_v36 = vrot.slane %v424_v33, 6 }
 0x229   : > { %v416_v28 = vpop.permute.xlu2 %415 }
 0x22a   : > { %v419_v29 = vsel %vm405_vm11, %v416_v28, %v418_v27 }
 0x22b   : > { %421 = vst [vmem:[#allocation2 + $0x50] sm:$0x1] %v419_v29 }
 0x231   : > { %v445_v32 = vpop.permute.xlu2 %444 }
 0x232   : > { %v427_v40 = vld [vmem:[#allocation2 + $0x50] sm:$0x1] }
 0x233   : > { %v469_v46 = vrot.slane %v427_v40, 2  ;;  %v490_v9 = vsub.f32 %v427_v40, %v483_v36 }
 0x235   : > { %v470_v58 = vsel %vm201_vm0, %v467_v54, %v469_v46  ;;  %v554_v12 = vrot.slane %v490_v9, 1  ;;  %v582_v17 = vmul.f32 2.0, %v490_v9 }
 0x237   : > { %v589_v18 = vrot.slane %v582_v17, 1 }
 0x239   : > { %v398_v30 = vpop.permute.xlu1 %397  ;;  %v451_v45 = vpop.permute.xlu2 %450 }
 0x23a   : > { %v406_v31 = vsel %vm405_vm11, %v398_v30, %v400_v26 }
 0x23b   : > { %410 = vst [vmem:[#allocation2 + $0x20] sm:$0xff] %v406_v31  ;;  %v481_v35 = vrot.slane %v406_v31, 6 }
 0x23c   : > { %412 = vst [vmem:[#allocation2 + $0xf] sm:$0x1] %v406_v31 }
 0x23d   : > { %v484_v38 = vsel %vm247_vm3, %v481_v35, %v483_v36 }
 0x23e   : > { %v447_v34 = vpop.permute.xlu0 %446  ;;  %v489_v44 = vsub.f32 %v407_v25, %v484_v38 }
 0x240   : > { %v552_v57 = vrot.slane %v489_v44, 1  ;;  %v581_v11 = vmul.f32 2.0, %v489_v44 }
 0x241   : > { %v443_v37 = vpop.permute.xlu1 %442 }
 0x242   : > { %v425_v41 = vld [vmem:[#allocation2 + $0x20] sm:$0xfe]  ;;  %v454_v43 = vsel %vm405_vm11, %v443_v37, %v445_v32  ;;  %v555_v14 = vsel %vm219_vm2, %v552_v57, %v554_v12  ;;  %v587_v15 = vrot.slane %v581_v11, 1 }
 0x243   : > { %v422_v39 = vld [vmem:[#allocation2 + $0x8] sm:$0x80]  ;;  %v466_v49 = vrot.slane %v425_v41, 2 }
 0x244   : > { %v480_v42 = vrot.slane %v422_v39, 6  ;;  %v460_v50 = vadd.f32 %v454_v43, %v422_v39  ;;  %v590_v19 = vsel %vm219_vm2, %v587_v15, %v589_v18 }
 0x245   : > { %v468_v0 = vsel %vm201_vm0, %v466_v49, %v467_v54 }
 0x246   : > { %v453_v47 = vpop.permute.xlu0 %452  ;;  %v482_v48 = vsel %vm247_vm3, %v480_v42, %v481_v35  ;;  %v474_v60 = vadd.f32 %v466_v49, %v460_v50  ;;  %v1727_v35 = vmov 0.0  }
 0x247   : > { %v456_v51 = vsel %vm405_vm11, %v451_v45, %v453_v47  ;;  %v488_v52 = vsub.f32 %v425_v41, %v482_v48  ;;  %752 = vst.msk [vmem:[#allocation2 + $0x40] sm:$0xff] %vm749_vm13, %v1727_v35 }
 0x248   : > { %v462_v53 = vadd.f32 %v456_v51, %v424_v33  ;;  %v495_v2 = vrot.slane %v474_v60, 7  ;;  %751 = vst.msk [vmem:[#allocation2 + $0x28] sm:$0xff] %vm749_vm13, %v1727_v35 }
 0x249   : > { %v449_v55 = vpop.permute.xlu1 %448  ;;  %v551_v56 = vrot.slane %v488_v52, 1  ;;  %v580_v10 = vmul.f32 2.0, %v488_v52 }
 0x24a   : > { %v455_v59 = vsel %vm405_vm11, %v447_v34, %v449_v55  ;;  %v476_v61 = vadd.f32 %v470_v58, %v462_v53 }
 0x24b   : > { %v461_v62 = vadd.f32 %v455_v59, %v406_v31  ;;  %v553_v63 = vsel %vm219_vm2, %v551_v56, %v552_v57  ;;  %v586_v13 = vrot.slane %v580_v10, 1 }
 0x24c   : > { %568 = vrot.lane.b32.xlu0 %v553_v63, %s1726_s28  ;;  %v498_v3 = vrot.slane %v476_v61, 7 }
 0x24d   : > { %v475_v1 = vadd.f32 %v468_v0, %v461_v62  ;;  %v588_v16 = vsel %vm219_vm2, %v586_v13, %v587_v15 }
 0x24f   : > { %v496_v4 = vrot.slane %v475_v1, 7 }
 0x251   : > { %v499_v5 = vsel %vm494_vm12, %v496_v4, %v498_v3  ;;  %v497_v6 = vsel %vm494_vm12, %v495_v2, %v496_v4 }
 0x252   : > { %514 = vrot.lane.b32.xlu2 %v499_v5, %s1726_s28  ;;  %503 = vst [vmem:[#allocation2 + $0x38] sm:$0xff] %v499_v5  ;;  %512 = vrot.lane.b32.xlu1 %v497_v6, %s1726_s28 }
 0x253   : > { %502 = vst [vmem:[#allocation2 + $0x20] sm:$0xff] %v497_v6 }
 0x254   : > { %506 = vrot.lane.b32.xlu0 %v499_v5, %s1725_s27 }
 0x25a   : > { %504 = vrot.lane.b32.xlu2 %v497_v6, %s1725_s27  ;;  %570 = vrot.lane.b32.xlu1 %v555_v14, %s1726_s28 }
 0x25c   : > { %591 = vrot.lane.b32.xlu0 %v588_v16, %s1725_s27 }
 0x262   : > { %562 = vrot.lane.b32.xlu2 %v555_v14, %s1725_s27  ;;  %560 = vrot.lane.b32.xlu1 %v553_v63, %s1725_s27 }
 0x264   : > { %609 = vrot.lane.b32.xlu0 %v1846_v8, %s1724_s26 }
 0x26a   : > { %593 = vrot.lane.b32.xlu1 %v590_v19, %s1725_s27 }
 0x2ac   : > { %v515_v20 = vpop.permute.xlu2 %514 }
 0x2ad   : > { %519 = vst.msk [vmem:[#allocation2 + $0x38] sm:$0xff] %vm281_vm4, %v515_v20 }
 0x2b4   : > { %v505_v21 = vpop.permute.xlu2 %504  ;;  %v1928_v22 = vld [vmem:[#allocation2 + $0x38] sm:$0xff] }
 0x2b5   : > { %510 = vst.msk [vmem:[#allocation2 + $0x18] sm:$0xff] %vm272_vm7, %v505_v21 }
 0x2b6   : > { %559 = vst [vmem:[#allocation2 + $0x38] sm:$0xff] %v555_v14 }
 0x2bc   : > { %v524_v23 = vld [vmem:[#allocation2 + $0x18] sm:$0xff]  ;;  %v563_v29 = vpop.permute.xlu2 %562 }
 0x2bd   : > { %530 = vrot.lane.b32.xlu0 %v524_v23, %s1721_s16 }
 0x2be   : > { %v569_v24 = vpop.permute.xlu0 %568 }
 0x2c4   : > { %v513_v25 = vpop.permute.xlu1 %512 }
 0x2c5   : > { %518 = vst.msk [vmem:[#allocation2 + $0x20] sm:$0xff] %vm281_vm4, %v513_v25  ;;  %536 = vrot.lane.b32.xlu0 %v1928_v22, %s1721_s16 }
 0x2c6   : > { %v507_v26 = vpop.permute.xlu0 %506 }
 0x2c7   : > { %511 = vst.msk [vmem:[#allocation2 + $0x30] sm:$0xff] %vm272_vm7, %v507_v26 }
 0x2cc   : > { %v1936_v27 = vld [vmem:[#allocation2 + $0x20] sm:$0xff]  ;;  %v571_v28 = vpop.permute.xlu1 %570 }
 0x2cd   : > { %558 = vst [vmem:[#allocation2 + $0x20] sm:$0xff] %v553_v63 }
 0x2ce   : > { %574 = vst.msk [vmem:[#allocation2 + $0x20] sm:$0xff] %vm281_vm4, %v569_v24  ;;  %v525_v30 = vld [vmem:[#allocation2 + $0x30] sm:$0xff]  ;;  %v592_v37 = vpop.permute.xlu0 %591 }
 0x2cf   : > { %567 = vst.msk [vmem:[#allocation2 + $0x30] sm:$0xff] %vm272_vm7, %v563_v29  ;;  %v1996_v29 = vld [vmem:[#allocation2 + $0x28] sm:$0xff] }
 0x2d0   : > { %575 = vst.msk [vmem:[#allocation2 + $0x38] sm:$0xff] %vm281_vm4, %v571_v28 }
 0x2d4   : > { %v561_v31 = vpop.permute.xlu1 %560 }
 0x2d5   : > { %v577_v32 = vld [vmem:[#allocation2 + $0x20] sm:$0xff]  ;;  %566 = vst.msk [vmem:[#allocation2 + $0x18] sm:$0xff] %vm272_vm7, %v561_v31 }
 0x2d6   : > { %607 = vrot.lane.b32.xlu2 %v577_v32, %s1724_s26  ;;  %v578_v33 = vld [vmem:[#allocation2 + $0x30] sm:$0xff]  ;;  %v598_v39 = vadd.f32 %v592_v37, %v577_v32  ;;  %v610_v40 = vpop.permute.xlu0 %609 }
 0x2d7   : > { %v579_v34 = vld [vmem:[#allocation2 + $0x38] sm:$0xff]  ;;  %747 = vst.msk [vmem:[#allocation2 + $0x30] sm:$0xff] %vm272_vm7, %v1727_v35 }
 0x2d8   : > { %611 = vrot.lane.b32.xlu1 %v579_v34, %s1724_s26 }
 0x2dc   : > { %v576_v36 = vld [vmem:[#allocation2 + $0x18] sm:$0xff]  ;;  %v594_v47 = vpop.permute.xlu1 %593 }
 0x2dd   : > { %746 = vst.msk [vmem:[#allocation2 + $0x18] sm:$0xff] %vm272_vm7, %v1727_v35  ;;  %v597_v38 = vadd.f32 %v592_v37, %v576_v36  ;;  %v599_v48 = vadd.f32 %v594_v47, %v578_v33  ;;  %v600_v49 = vadd.f32 %v594_v47, %v579_v34  ;;  %v937_v33 = vrot.slane %v1996_v29, 6 }
 0x2de   : > { %613 = vrot.lane.b32.xlu2 %v1842_v7, %s1724_s26 }
 0x2e0   : > { %532 = vrot.lane.b32.xlu1 %v1936_v27, %s1721_s16 }
 0x2e6   : > { %534 = vrot.lane.b32.xlu2 %v525_v30, %s1721_s16  ;;  %v932_v30 = vld [vmem:[#allocation2 + $0x40] sm:$0x7f] }
 0x2e7   : > { %v939_v34 = vrot.slane %v932_v30, 6  ;;  %v894_v30 = vld [vmem:[#allocation2 + $0x30] sm:$0x7f] }
 0x32f   : > { %v531_v3 = vpop.permute.xlu0 %530 }
 0x330   : > { %v608_v41 = vpop.permute.xlu2 %607 }
 0x331   : > { %v615_v42 = vsel %vm334_vm8, %v608_v41, %v610_v40  ;;  %v1958_v43 = vadd.f32 %v608_v41, %v597_v38  ;;  %v940_v38 = vsel %vm247_vm3, %v937_v33, %v939_v34 }
 0x332   : > { %v1960_v44 = vadd.f32 %v615_v42, %v598_v39 }
 0x333   : > { %v629_v45 = vmul.f32 %v1958_v43, %v1958_v43 }
 0x334   : > { %v630_v46 = vmul.f32 %v1960_v44, %v1960_v44 }
 0x335   : > { %637 = vrot.lane.b32.xlu1 %v629_v45, %s1721_s16 }
 0x336   : > { %639 = vrot.lane.b32.xlu2 %v630_v46, %s1721_s16 }
 0x337   : > { %v537_v24 = vpop.permute.xlu0 %536 }
 0x338   : > { %v614_v50 = vpop.permute.xlu2 %613  ;;  %v1994_v28 = vsub.f32 %v1842_v7, %v537_v24 }
 0x33a   : > { %v628_v39 = vmul.f32 %v1994_v28, %v1994_v28 }
 0x340   : > { %v535_v57 = vpop.permute.xlu2 %534 }
 0x341   : > { %v539_v26 = vsel %vm405_vm11, %v535_v57, %v537_v24 }
 0x342   : > { %v1999_v31 = vsub.f32 %v1928_v22, %v539_v26 }
 0x344   : > { %v627_v41 = vmul.f32 %v1999_v31, %v1999_v31 }
 0x34a   : > { %v612_v51 = vpop.permute.xlu1 %611 }
 0x34b   : > { %v616_v52 = vsel %vm334_vm8, %v612_v51, %v614_v50  ;;  %v1969_v53 = vadd.f32 %v612_v51, %v599_v48 }
 0x34c   : > { %v1971_v54 = vadd.f32 %v616_v52, %v600_v49 }
 0x34d   : > { %v631_v55 = vmul.f32 %v1969_v53, %v1969_v53 }
 0x34e   : > { %v632_v56 = vmul.f32 %v1971_v54, %v1971_v54 }
 0x34f   : > { %641 = vrot.lane.b32.xlu0 %v631_v55, %s1721_s16 }
 0x350   : > { %643 = vrot.lane.b32.xlu1 %v632_v56, %s1721_s16 }
 0x352   : > { %v533_v58 = vpop.permute.xlu1 %532 }
 0x353   : > { %v1980_v59 = vsub.f32 %v1846_v8, %v533_v58  ;;  %v538_v4 = vsel %vm405_vm11, %v531_v3, %v533_v58 }
 0x354   : > { %v1986_v9 = vsub.f32 %v1936_v27, %v538_v4 }
 0x355   : > { %v626_v60 = vmul.f32 %v1980_v59, %v1980_v59 }
 0x356   : > { %v625_v11 = vmul.f32 %v1986_v9, %v1986_v9 }
 0x390   : > { %v640_v61 = vpop.permute.xlu2 %639 }
 0x391   : > { %v652_v62 = vadd.f32 %v640_v61, %v626_v60 }
 0x393   : > { %v656_v63 = vadd.f32 1e-06, %v652_v62 }
 0x395   : > { %1613 = vrsqrt.f32 %v656_v63  ;;  %vm678_vm14 = vcmp.eq.f32.partialorder %v656_v63, inf  ;;  %v681_v13 = vand.u32 2147483648, %v656_v63  ;;  %vm680_vm15 = vcmp.eq.f32.partialorder %v656_v63, 0.0 }
 0x39b   : > { %v1614_v0 = vpop.eup %1613 }
 0x39c   : > { %v672_v1 = vmul.f32 %v1614_v0, %v656_v63 }
 0x39e   : > { %v673_v2 = vmul.f32 %v1614_v0, %v672_v1 }
 0x3a0   : > { %v674_v5 = vmul.f32 0.5, %v673_v2 }
 0x3a2   : > { %v675_v6 = vsub.f32 1.5, %v674_v5 }
 0x3a4   : > { %v676_v8 = vmul.f32 %v1614_v0, %v675_v6 }
 0x3a6   : > { %v677_v10 = vmul.f32 %v676_v8, %v656_v63 }
 0x3a7   : > { %v638_v12 = vpop.permute.xlu1 %637 }
 0x3a8   : > { %v645_v14 = vsel %vm405_vm11, %v638_v12, %v640_v61  ;;  %v679_v15 = vsel %vm678_vm14, %v656_v63, %v677_v10  ;;  %v710_v10 = vlaneseq }
 0x3a9   : > { %v651_v16 = vadd.f32 %v645_v14, %v625_v11  ;;  %v682_v17 = vsel %vm680_vm15, %v681_v13, %v679_v15  ;;  %v2025_v11 = vld [vmem:[#allocation2 + $0x18] sm:$0xff] }
 0x3aa   : > { %723 = vrot.lane.b32.xlu0 %v682_v17, %s1725_s27  ;;  %vm737_vm15 = vcmp.lt.s32.totalorder %v710_v10, 384  ;;  %v898_v13 = vrot.slane %v2025_v11, 6 }
 0x3ab   : > { %v655_v18 = vadd.f32 1e-06, %v651_v16  ;;  %740 = vst.msk [vmem:[#allocation2 + $0x7] ss:$8 sm:$0x7] %vm737_vm15, %v1727_v35 }
 0x3ac   : > { %743 = vst.msk [vmem:[#allocation2 + $0x48] ss:$8 sm:$0x7] %vm737_vm15, %v1727_v35 }
 0x3ad   : > { %1615 = vrsqrt.f32 %v655_v18  ;;  %vm666_vm1 = vcmp.eq.f32.partialorder %v655_v18, inf  ;;  %v669_v36 = vand.u32 2147483648, %v655_v18  ;;  %vm668_vm4 = vcmp.eq.f32.partialorder %v655_v18, 0.0  ;;  %745 = vst.msk [vmem:[#allocation2] sm:$0xff] %vm272_vm7, %v1727_v35 }
 0x3ae   : > { %750 = vst.msk [vmem:[#allocation2 + $0x10] sm:$0xff] %vm749_vm13, %v1727_v35 }
 0x3af   : > { %748 = vst.msk [vmem:[#allocation2 + $0x48] sm:$0xff] %vm272_vm7, %v1727_v35 }
 0x3b0   : > { %753 = vst.msk [vmem:[#allocation2 + $0x58] sm:$0xff] %vm749_vm13, %v1727_v35 }
 0x3b2   : > { %947 = vrot.lane.b32.xlu0 %v940_v38, %s1724_s26  ;;  %v872_v35 = vld [vmem:[#allocation2 + $0x8] sm:$0x80] }
 0x3b3   : > { %v1616_v19 = vpop.eup %1615  ;;  %v876_v24 = vrot.slane %v872_v35, 6 }
 0x3b4   : > { %v660_v20 = vmul.f32 %v1616_v19, %v655_v18  ;;  %v893_v12 = vld [vmem:[#allocation2] sm:$0x80] }
 0x3b5   : > { %v931_v14 = vld [vmem:[#allocation2 + $0x10] sm:$0x80]  ;;  %v897_v15 = vrot.slane %v893_v12, 6 }
 0x3b6   : > { %v661_v21 = vmul.f32 %v1616_v19, %v660_v20  ;;  %v936_v16 = vrot.slane %v931_v14, 6 }
 0x3b7   : > { %v899_v17 = vsel %vm247_vm3, %v897_v15, %v898_v13 }
 0x3b8   : > { %v662_v23 = vmul.f32 0.5, %v661_v21 }
 0x3ba   : > { %v663_v25 = vsub.f32 1.5, %v662_v23  ;;  %902 = vrot.lane.b32.xlu0 %v899_v17, %s1721_s16 }
 0x3bc   : > { %v664_v27 = vmul.f32 %v1616_v19, %v663_v25  ;;  %v711_v19 = vand.u32 127, %v710_v10 }
 0x3be   : > { %v665_v32 = vmul.f32 %v664_v27, %v655_v18  ;;  %vm714_vm7 = vcmp.lt.s32.totalorder %v711_v19, 16  ;;  %v756_v19 = vand.u32 2147483647, %v1986_v9 }
 0x3c0   : > { %v667_v37 = vsel %vm666_vm1, %v655_v18, %v665_v32  ;;  %v938_v18 = vsel %vm247_vm3, %v936_v16, %v937_v33  ;;  %v900_v32 = vrot.slane %v894_v30, 6  ;;  %v790_v35 = vmul.f32 2.4142137, %v756_v19 }
 0x3c1   : > { %v642_v7 = vpop.permute.xlu0 %641  ;;  %v670_v40 = vsel %vm668_vm4, %v669_v36, %v667_v37 }
 0x3c2   : > { %v644_v22 = vpop.permute.xlu1 %643  ;;  %721 = vrot.lane.b32.xlu2 %v670_v40, %s1725_s27  ;;  %v901_v33 = vsel %vm247_vm3, %v898_v13, %v900_v32 }
 0x3c3   : > { %v646_v42 = vsel %vm405_vm11, %v642_v7, %v644_v22  ;;  %v654_v45 = vadd.f32 %v644_v22, %v628_v39  ;;  %v2058_v22 = vld [vmem:[#allocation2 + $0x50] sm:$0x1] }
 0x3c4   : > { %v653_v46 = vadd.f32 %v646_v42, %v627_v41 }
 0x3c5   : > { %v658_v47 = vadd.f32 1e-06, %v654_v45 }
 0x3c6   : > { %v657_v48 = vadd.f32 1e-06, %v653_v46 }
 0x3c7   : > { %1617 = vrsqrt.f32 %v658_v47  ;;  %vm702_vm5 = vcmp.eq.f32.partialorder %v658_v47, inf  ;;  %v705_v1 = vand.u32 2147483648, %v658_v47  ;;  %vm704_vm6 = vcmp.eq.f32.partialorder %v658_v47, 0.0 }
 0x3c8   : > { %1619 = vrsqrt.f32 %v657_v48  ;;  %vm690_vm9 = vcmp.eq.f32.partialorder %v657_v48, inf  ;;  %v693_v4 = vand.u32 2147483648, %v657_v48  ;;  %vm692_vm14 = vcmp.eq.f32.partialorder %v657_v48, 0.0 }
 0x3cd   : > { %v1618_v49 = vpop.eup %1617 }
 0x3ce   : > { %v1620_v50 = vpop.eup %1619  ;;  %v696_v51 = vmul.f32 %v1618_v49, %v658_v47 }
 0x3cf   : > { %v684_v52 = vmul.f32 %v1620_v50, %v657_v48 }
 0x3d0   : > { %v697_v55 = vmul.f32 %v1618_v49, %v696_v51 }
 0x3d1   : > { %v685_v56 = vmul.f32 %v1620_v50, %v684_v52 }
 0x3d2   : > { %v698_v57 = vmul.f32 0.5, %v697_v55 }
 0x3d3   : > { %v686_v58 = vmul.f32 0.5, %v685_v56 }
 0x3d4   : > { %v699_v60 = vsub.f32 1.5, %v698_v57 }
 0x3d5   : > { %v687_v61 = vsub.f32 1.5, %v686_v58 }
 0x3d6   : > { %v700_v62 = vmul.f32 %v1618_v49, %v699_v60 }
 0x3d7   : > { %v688_v63 = vmul.f32 %v1620_v50, %v687_v61 }
 0x3d8   : > { %v701_v0 = vmul.f32 %v700_v62, %v658_v47 }
 0x3d9   : > { %v689_v2 = vmul.f32 %v688_v63, %v657_v48 }
 0x3da   : > { %v703_v3 = vsel %vm702_vm5, %v658_v47, %v701_v0  ;;  %v929_v0 = vld [vmem:[#allocation2 + $0x18] sm:$0xfe] }
 0x3db   : > { %v706_v5 = vsel %vm704_vm6, %v705_v1, %v703_v3  ;;  %v691_v6 = vsel %vm690_vm9, %v657_v48, %v689_v2 }
 0x3dc   : > { %727 = vrot.lane.b32.xlu2 %v706_v5, %s1725_s27  ;;  %v694_v8 = vsel %vm692_vm14, %v693_v4, %v691_v6 }
 0x3dd   : > { %725 = vrot.lane.b32.xlu1 %v694_v8, %s1725_s27 }
 0x3e4   : > { %951 = vrot.lane.b32.xlu2 %v939_v34, %s1724_s26  ;;  %v2049_v34 = vld [vmem:[#allocation2 + $0x30] sm:$0xff] }
 0x3e5   : > { %943 = vrot.lane.b32.xlu1 %v938_v18, %s1724_s26 }
 0x3ec   : > { %906 = vrot.lane.b32.xlu2 %v901_v33, %s1721_s16 }
 0x41c   : > { %v724_v20 = vpop.permute.xlu0 %723  ;;  %v722_v21 = vpop.permute.xlu2 %721 }
 0x41d   : > { %v729_v23 = vsel %vm361_vm10, %v722_v21, %v724_v20  ;;  %v759_v21 = vand.u32 2147483647, %v1994_v28 }
 0x41e   : > { %v2036_v25 = vsel %vm714_vm7, %v729_v23, 0.0  ;;  %v930_v23 = vld [vmem:[#allocation2 + $0x48] sm:$0x1] }
 0x41f   : > { %754 = vst [vmem:[#allocation2 + $0x20] sm:$0xff] %v2036_v25  ;;  %v877_v26 = vrot.slane %v2036_v25, 6 }
 0x421   : > { %v878_v27 = vsel %vm247_vm3, %v876_v24, %v877_v26  ;;  %v793_v24 = vmul.f32 2.4142137, %v759_v21 }
 0x422   : > { %904 = vrot.lane.b32.xlu1 %v878_v27, %s1721_s16  ;;  %941 = vrot.lane.b32.xlu0 %v878_v27, %s1724_s26 }
 0x424   : > { %v948_v55 = vpop.permute.xlu0 %947 }
 0x426   : > { %v870_v39 = vld [vmem:[#allocation2 + $0x20] sm:$0xfe] }
 0x427   : > { %v884_v42 = vmax.f32 %v870_v39, %v878_v27 }
 0x429   : > { %v1025_v49 = vrot.slane %v884_v42, 1 }
 0x42a   : > { %820 = vrot.lane.b32.xlu0 %v1958_v43, %s1721_s16 }
 0x42c   : > { %v903_v57 = vpop.permute.xlu0 %902 }
 0x432   : > { %826 = vrot.lane.b32.xlu0 %v1971_v54, %s1721_s16 }
 0x436   : > { %v728_v36 = vpop.permute.xlu2 %727 }
 0x43a   : > { %856 = vrot.lane.b32.xlu0 %v2049_v34, %s1721_s16 }
 0x43e   : > { %v952_v61 = vpop.permute.xlu2 %951 }
 0x446   : > { %v907_v63 = vpop.permute.xlu2 %906 }
 0x44f   : > { %v726_v37 = vpop.permute.xlu1 %725 }
 0x450   : > { %v730_v38 = vsel %vm361_vm10, %v726_v37, %v728_v36 }
 0x451   : > { %v2055_v7 = vsel %vm714_vm7, %v730_v38, 0.0 }
 0x452   : > { %755 = vst [vmem:[#allocation2 + $0x38] sm:$0xff] %v2055_v7 }
 0x457   : > { %v944_v56 = vpop.permute.xlu1 %943 }
 0x459   : > { %v873_v40 = vld [vmem:[#allocation2 + $0x38] sm:$0x7f] }
 0x45a   : > { %v879_v41 = vrot.slane %v873_v40, 6 }
 0x45c   : > { %949 = vrot.lane.b32.xlu1 %v879_v41, %s1724_s26  ;;  %v880_v45 = vsel %vm247_vm3, %v877_v26, %v879_v41  ;;  %v886_v46 = vmax.f32 %v2058_v22, %v879_v41  ;;  %v887_v26 = vld [vmem:[#allocation2 + $0x20] sm:$0xfe] }
 0x45d   : > { %908 = vrot.lane.b32.xlu0 %v880_v45, %s1721_s16  ;;  %v885_v47 = vmax.f32 %v2055_v7, %v880_v45  ;;  %945 = vrot.lane.b32.xlu2 %v880_v45, %s1724_s26 }
 0x45e   : > { %v1028_v48 = vrot.slane %v886_v46, 1 }
 0x45f   : > { %v1026_v50 = vrot.slane %v885_v47, 1 }
 0x461   : > { %v2067_v51 = vsel %vm219_vm2, %v1025_v49, %v1026_v50  ;;  %v2070_v52 = vsel %vm219_vm2, %v1026_v50, %v1028_v48 }
 0x464   : > { %910 = vrot.lane.b32.xlu1 %v900_v32, %s1721_s16 }
 0x465   : > { %912 = vrot.lane.b32.xlu2 %v879_v41, %s1721_s16 }
 0x46c   : > { %822 = vrot.lane.b32.xlu1 %v1960_v44, %s1721_s16 }
 0x46d   : > { %824 = vrot.lane.b32.xlu2 %v1969_v53, %s1721_s16 }
 0x474   : > { %852 = vrot.lane.b32.xlu1 %v2025_v11, %s1721_s16 }
 0x475   : > { %854 = vrot.lane.b32.xlu2 %v2036_v25, %s1721_s16 }
 0x47c   : > { %858 = vrot.lane.b32.xlu1 %v2055_v7, %s1721_s16 }
 0x494   : > { %v2084_v58 = vpop.permute.xlu1 %904  ;;  %v942_v62 = vpop.permute.xlu0 %941 }
 0x495   : > { %v914_v60 = vsel %vm405_vm11, %v903_v57, %v2084_v58  ;;  %v953_v2 = vsel %vm334_vm8, %v942_v62, %v944_v56  ;;  %v962_v3 = vmax.f32 %v929_v0, %v942_v62  ;;  %v757_v57 = vand.u32 2147483647, %v1980_v59 }
 0x496   : > { %v963_v4 = vmax.f32 %v870_v39, %v953_v2  ;;  %v923_v30 = vmax.f32 %v887_v26, %v914_v60  ;;  %v758_v39 = vand.u32 2147483647, %v1999_v31 }
 0x497   : > { %v994_v12 = vrot.slane %v962_v3, 1 }
 0x498   : > { %v997_v14 = vrot.slane %v963_v4, 1  ;;  %v974_v45 = vrot.slane %v923_v30, 1  ;;  %v766_v50 = vmul.f32 0.41421357, %v758_v39  ;;  %v792_v0 = vmul.f32 2.4142137, %v758_v39 }
 0x49c   : > { %v2088_v1 = vpop.permute.xlu0 %820 }
 0x4a4   : > { %v2095_v17 = vpop.permute.xlu0 %826 }
 0x4ac   : > { %v2101_v20 = vpop.permute.xlu0 %856 }
 0x4b7   : > { %v946_v5 = vpop.permute.xlu2 %945 }
 0x4b8   : > { %v954_v6 = vsel %vm334_vm8, %v946_v5, %v948_v55  ;;  %v964_v8 = vmax.f32 %v2049_v34, %v946_v5  ;;  %v764_v5 = vmul.f32 0.41421357, %v756_v19 }
 0x4b9   : > { %v965_v10 = vmax.f32 %v2055_v7, %v954_v6  ;;  %v765_v6 = vmul.f32 0.41421357, %v757_v57 }
 0x4ba   : > { %v995_v13 = vrot.slane %v964_v8, 1 }
 0x4bb   : > { %v998_v15 = vrot.slane %v965_v10, 1 }
 0x4bc   : > { %v996_v16 = vsel %vm219_vm2, %v994_v12, %v995_v13 }
 0x4bd   : > { %1004 = vrot.lane.b32.xlu2 %v996_v16, %s1721_s16  ;;  %v999_v18 = vsel %vm219_vm2, %v997_v14, %v998_v15  ;;  %v888_v16 = vld [vmem:[#allocation2 + $0x28] sm:$0xfe] }
 0x4be   : > { %1006 = vrot.lane.b32.xlu0 %v999_v18, %s1721_s16 }
 0x4bf   : > { %v913_v46 = vpop.permute.xlu2 %912 }
 0x4c6   : > { %798 = vrot.lane.b32.xlu0 %v790_v35, %s1724_s26 }
 0x4c7   : > { %v825_v3 = vpop.permute.xlu2 %824 }
 0x4ce   : > { %v950_v27 = vpop.permute.xlu1 %949  ;;  %804 = vrot.lane.b32.xlu0 %v793_v24, %s1724_s26  ;;  %v837_v24 = vmul.f32 %v2095_v17, %v1994_v28 }
 0x4cf   : > { %v955_v32 = vsel %vm334_vm8, %v950_v27, %v952_v61  ;;  %v966_v33 = vmax.f32 %v930_v23, %v950_v27  ;;  %v909_v36 = vpop.permute.xlu0 %908  ;;  %v855_v10 = vpop.permute.xlu2 %854  ;;  %v924_v23 = vmax.f32 %v888_v16, %v2084_v58 }
 0x4d0   : > { %v967_v37 = vmax.f32 %v2058_v22, %v955_v32  ;;  %v915_v38 = vsel %vm405_vm11, %v907_v63, %v909_v36  ;;  %v891_v22 = vld [vmem:[#allocation2 + $0x50] sm:$0x1]  ;;  %v791_v63 = vmul.f32 2.4142137, %v757_v57  ;;  %vm841_vm3 = vcmp.ge.f32.partialorder %v837_v24, 0.0 }
 0x4d1   : > { %v1000_v40 = vrot.slane %v966_v33, 1  ;;  %v925_v41 = vmax.f32 %v2055_v7, %v915_v38  ;;  %v977_v32 = vrot.slane %v924_v23, 1 }
 0x4d2   : > { %v1002_v42 = vrot.slane %v967_v37, 1 }
 0x4d3   : > { %v975_v47 = vrot.slane %v925_v41, 1  ;;  %v1001_v48 = vsel %vm219_vm2, %v995_v13, %v1000_v40  ;;  %v767_v13 = vmul.f32 0.41421357, %v759_v21  ;;  %v829_v41 = vsel %vm405_vm11, %v825_v3, %v2095_v17 }
 0x4d4   : > { %1008 = vrot.lane.b32.xlu1 %v1001_v48, %s1721_s16  ;;  %v1003_v49 = vsel %vm219_vm2, %v998_v15, %v1002_v42  ;;  %v892_v15 = vld [vmem:[#allocation2 + $0x58] sm:$0x1]  ;;  %v836_v42 = vmul.f32 %v829_v41, %v1999_v31 }
 0x4d5   : > { %1010 = vrot.lane.b32.xlu2 %v1003_v49, %s1721_s16  ;;  %v976_v55 = vsel %vm219_vm2, %v974_v45, %v975_v47  ;;  %v928_v35 = vmax.f32 %v892_v15, %v913_v46 }
 0x4d6   : > { %v911_v56 = vpop.permute.xlu1 %910  ;;  %776 = vrot.lane.b32.xlu0 %v766_v50, %s1724_s26 }
 0x4d7   : > { %v916_v60 = vsel %vm405_vm11, %v911_v56, %v913_v46 }
 0x4d8   : > { %v927_v61 = vmax.f32 %v891_v22, %v916_v60 }
 0x4da   : > { %v980_v62 = vrot.slane %v927_v61, 1  ;;  %v760_v61 = vand.u32 2147483647, %v1958_v43 }
 0x4dc   : > { %800 = vrot.lane.b32.xlu1 %v791_v63, %s1724_s26  ;;  %v981_v2 = vsel %vm219_vm2, %v975_v47, %v980_v62 }
 0x4dd   : > { %802 = vrot.lane.b32.xlu2 %v792_v0, %s1724_s26 }
 0x4de   : > { %v823_v4 = vpop.permute.xlu1 %822  ;;  %1030 = vrot.lane.b32.xlu0 %v2067_v51, %s1725_s27  ;;  %v2132_v51 = vld [vmem:[#allocation2 + $0x40] sm:$0xff] }
 0x4df   : > { %v926_v18 = vmax.f32 %v2132_v51, %v909_v36  ;;  %v828_v21 = vsel %vm405_vm11, %v2088_v1, %v823_v4  ;;  %v835_v27 = vmul.f32 %v823_v4, %v1980_v59 }
 0x4e0   : > { %v834_v30 = vmul.f32 %v828_v21, %v1986_v9  ;;  %v867_v9 = vmax.f32 %v1996_v29, %v855_v10 }
 0x4e1   : > { %v978_v26 = vrot.slane %v926_v18, 1  ;;  %vm839_vm10 = vcmp.ge.f32.partialorder %v835_v27, 0.0  ;;  %v762_v18 = vand.u32 2147483647, %v1969_v53 }
 0x4e2   : > { %vm838_vm1 = vcmp.ge.f32.partialorder %v834_v30, 0.0 }
 0x4e3   : > { %v979_v38 = vsel %vm219_vm2, %v977_v32, %v978_v26 }
 0x4e4   : > { %772 = vrot.lane.b32.xlu1 %v764_v5, %s1724_s26 }
 0x4e5   : > { %774 = vrot.lane.b32.xlu2 %v765_v6, %s1724_s26  ;;  %v761_v6 = vand.u32 2147483647, %v1960_v44  ;;  %v763_v44 = vand.u32 2147483647, %v1971_v54 }
 0x4e6   : > { %v853_v8 = vpop.permute.xlu1 %852 }
 0x4e7   : > { %v860_v12 = vsel %vm405_vm11, %v853_v8, %v855_v10 }
 0x4e8   : > { %v866_v14 = vmax.f32 %v2036_v25, %v860_v12 }
 0x4ec   : > { %778 = vrot.lane.b32.xlu1 %v767_v13, %s1724_s26 }
 0x4ed   : > { %1062 = vrot.lane.b32.xlu2 %v866_v14, %s1724_s26 }
 0x4ee   : > { %v859_v39 = vpop.permute.xlu1 %858 }
 0x4ef   : > { %v869_v40 = vmax.f32 %v2132_v51, %v859_v39  ;;  %v861_v48 = vsel %vm405_vm11, %v2101_v20, %v859_v39 }
 0x4f0   : > { %v868_v49 = vmax.f32 %v2055_v7, %v861_v48 }
 0x4f4   : > { %1032 = vrot.lane.b32.xlu1 %v2070_v52, %s1725_s27  ;;  %v982_v52 = vrot.slane %v928_v35, 1 }
 0x4f6   : > { %v983_v36 = vsel %vm219_vm2, %v978_v26, %v982_v52  ;;  %vm840_vm2 = vcmp.ge.f32.partialorder %v836_v42, 0.0 }
 0x517   : > { %v1005_v19 = vpop.permute.xlu2 %1004 }
 0x52f   : > { %v1011_v33 = vpop.permute.xlu2 %1010 }
 0x530   : > { %v1007_v37 = vpop.permute.xlu0 %1006  ;;  %v1021_v58 = vsel %vm841_vm3, %v983_v36, %v1011_v33 }
 0x531   : > { %v1012_v1 = vsel %vm405_vm11, %v1005_v19, %v1007_v37  ;;  %1046 = vrot.lane.b32.xlu2 %v1021_v58, %s1724_s26  ;;  %v1019_v28 = vsel %vm839_vm10, %v979_v38, %v1007_v37 }
 0x532   : > { %1042 = vrot.lane.b32.xlu0 %v1019_v28, %s1724_s26  ;;  %v1018_v59 = vsel %vm838_vm1, %v976_v55, %v1012_v1 }
 0x537   : > { %v803_v50 = vpop.permute.xlu2 %802 }
 0x538   : > { %v799_v17 = vpop.permute.xlu0 %798  ;;  %vm814_vm9 = vcmp.ge.f32.partialorder %v762_v18, %v803_v50 }
 0x539   : > { %1040 = vrot.lane.b32.xlu2 %v1018_v59, %s1724_s26  ;;  %vm812_vm4 = vcmp.ge.f32.partialorder %v760_v61, %v799_v17 }
 0x53a   : > { %1064 = vrot.lane.b32.xlu0 %v867_v9, %s1724_s26 }
 0x53f   : > { %v775_v22 = vpop.permute.xlu2 %774 }
 0x540   : > { %v805_v55 = vpop.permute.xlu0 %804 }
 0x541   : > { %1068 = vrot.lane.b32.xlu2 %v869_v40, %s1724_s26  ;;  %v807_v19 = vsel %vm334_vm8, %v803_v50, %v805_v55 }
 0x542   : > { %vm815_vm14 = vcmp.ge.f32.partialorder %v763_v44, %v807_v19 }
 0x546   : > { %v1009_v45 = vpop.permute.xlu1 %1008 }
 0x547   : > { %v1013_v46 = vsel %vm405_vm11, %v1009_v45, %v1011_v33  ;;  %v1063_v56 = vpop.permute.xlu2 %1062 }
 0x548   : > { %v1020_v47 = vsel %vm840_vm2, %v981_v2, %v1013_v46  ;;  %v777_v57 = vpop.permute.xlu0 %776 }
 0x549   : > { %1044 = vrot.lane.b32.xlu1 %v1020_v47, %s1724_s26  ;;  %vm788_vm15 = vcmp.le.f32.partialorder %v762_v18, %v777_v57 }
 0x54e   : > { %v801_v31 = vpop.permute.xlu1 %800 }
 0x54f   : > { %v806_v4 = vsel %vm334_vm8, %v799_v17, %v801_v31  ;;  %v1152_v31 = vld [vmem:[#allocation2 + $0x8] sm:$0x80] }
 0x550   : > { %v1031_v63 = vpop.permute.xlu0 %1030  ;;  %vm813_vm11 = vcmp.ge.f32.partialorder %v761_v6, %v806_v4 }
 0x551   : > { %1066 = vrot.lane.b32.xlu1 %v868_v49, %s1724_s26 }
 0x556   : > { %v773_v62 = vpop.permute.xlu1 %772 }
 0x557   : > { %vm786_vm5 = vcmp.le.f32.partialorder %v760_v61, %v773_v62  ;;  %v780_v8 = vsel %vm334_vm8, %v773_v62, %v775_v22 }
 0x558   : > { %vm787_vm6 = vcmp.le.f32.partialorder %v761_v6, %v780_v8 }
 0x55e   : > { %v779_v5 = vpop.permute.xlu1 %778 }
 0x55f   : > { %v781_v35 = vsel %vm334_vm8, %v777_v57, %v779_v5 }
 0x560   : > { %vm789_vm7 = vcmp.le.f32.partialorder %v763_v44, %v781_v35 }
 0x566   : > { %v1033_v15 = vpop.permute.xlu1 %1032 }
 0x58b   : > { %v1047_v60 = vpop.permute.xlu2 %1046 }
 0x593   : > { %v1041_v0 = vpop.permute.xlu2 %1040 }
 0x594   : > { %v1054_v20 = vsel %vm812_vm4, %v1031_v63, %v1041_v0 }
 0x595   : > { %v1076_v2 = vsel %vm786_vm5, %v1063_v56, %v1054_v20 }
 0x596   : > { %1084 = vrot.lane.b32.xlu0 %v1076_v2, %s1726_s28 }
 0x59b   : > { %v1069_v21 = vpop.permute.xlu2 %1068 }
 0x5a4   : > { %v1043_v3 = vpop.permute.xlu0 %1042 }
 0x5a5   : > { %v1048_v10 = vsel %vm334_vm8, %v1041_v0, %v1043_v3 }
 0x5a6   : > { %v1055_v13 = vsel %vm813_vm11, %v1031_v63, %v1048_v10 }
 0x5ac   : > { %v1065_v43 = vpop.permute.xlu0 %1064 }
 0x5ad   : > { %v1070_v12 = vsel %vm334_vm8, %v1063_v56, %v1065_v43 }
 0x5ae   : > { %v1077_v14 = vsel %vm787_vm6, %v1070_v12, %v1055_v13 }
 0x5af   : > { %1086 = vrot.lane.b32.xlu1 %v1077_v14, %s1726_s28 }
 0x5bb   : > { %v1045_v16 = vpop.permute.xlu1 %1044 }
 0x5bc   : > { %v1049_v23 = vsel %vm334_vm8, %v1045_v16, %v1047_v60  ;;  %v1056_v24 = vsel %vm814_vm9, %v1033_v15, %v1045_v16  ;;  %v1157_v60 = vld [vmem:[#allocation2 + $0x50] sm:$0x1] }
 0x5bd   : > { %v1057_v53 = vsel %vm815_vm14, %v1033_v15, %v1049_v23  ;;  %v1164_v0 = vrot.slane %v1157_v60, 2 }
 0x5c3   : > { %v1067_v26 = vpop.permute.xlu1 %1066 }
 0x5c4   : > { %v1071_v27 = vsel %vm334_vm8, %v1067_v26, %v1069_v21  ;;  %v1078_v52 = vsel %vm788_vm15, %v1067_v26, %v1056_v24 }
 0x5c5   : > { %1088 = vrot.lane.b32.xlu2 %v1078_v52, %s1726_s28  ;;  %v1079_v30 = vsel %vm789_vm7, %v1071_v27, %v1057_v53 }
 0x5c6   : > { %1090 = vrot.lane.b32.xlu0 %v1079_v30, %s1726_s28 }
 0x5cd   : > { %1116 = vrot.lane.b32.xlu2 %v1996_v29, %s1724_s26 }
 0x608   : > { %v1085_v54 = vpop.permute.xlu0 %1084 }
 0x61f   : > { %v1089_v37 = vpop.permute.xlu2 %1088 }
 0x621   : > { %v1087_v32 = vpop.permute.xlu1 %1086 }
 0x622   : > { %v1092_v33 = vsel %vm749_vm13, %v1085_v54, %v1087_v32 }
 0x623   : > { %vm1096_vm3 = vcmp.gt.f32.partialorder %v2036_v25, %v1092_v33  ;;  %v1237_v33 = vld [vmem:[#allocation2 + $0x8] sm:$0x80] }
 0x624   : > { %v1098_v36 = vsel %vm1096_vm3, %v2036_v25, 0.0 }
 0x625   : > { %1100 = vst [vmem:[%s2183_s30] sm:$0xff] %v1098_v36  ;;  %1114 = vrot.lane.b32.xlu1 %v1098_v36, %s1724_s26 }
 0x627   : > { %v1117_v25 = vpop.permute.xlu2 %1116 }
 0x62d   : > { %1120 = vrot.lane.b32.xlu1 %v2132_v51, %s1724_s26 }
 0x638   : > { %v1091_v58 = vpop.permute.xlu0 %1090 }
 0x639   : > { %v1093_v38 = vsel %vm749_vm13, %v1089_v37, %v1091_v58 }
 0x63a   : > { %vm1097_vm10 = vcmp.gt.f32.partialorder %v2055_v7, %v1093_v38  ;;  %v1242_v38 = vld [vmem:[#allocation2 + $0x50] sm:$0x1] }
 0x63b   : > { %v1099_v1 = vsel %vm1097_vm10, %v2055_v7, 0.0 }
 0x63c   : > { %1101 = vst [vmem:[%s2183_s30 + $0x8] sm:$0xff] %v1099_v1  ;;  %1118 = vrot.lane.b32.xlu0 %v1099_v1, %s1724_s26 }
 0x697   : > { %v1115_v28 = vpop.permute.xlu1 %1114 }
 0x698   : > { %v1128_v59 = vmax.f32 %v2025_v11, %v1115_v28  ;;  %v1122_v9 = vsel %vm334_vm8, %v1115_v28, %v1117_v25 }
 0x699   : > { %v1129_v39 = vmax.f32 %v1098_v36, %v1122_v9 }
 0x69a   : > { %1136 = vrot.lane.b32.xlu2 %v1128_v59, %s1726_s28  ;;  %v1249_v59 = vrot.slane %v1242_v38, 2 }
 0x69b   : > { %1138 = vrot.lane.b32.xlu0 %v1129_v39, %s1726_s28 }
 0x69f   : > { %v1121_v40 = vpop.permute.xlu1 %1120 }
 0x6ae   : > { %v1119_v41 = vpop.permute.xlu0 %1118 }
 0x6af   : > { %v1123_v42 = vsel %vm334_vm8, %v1119_v41, %v1121_v40  ;;  %v1130_v7 = vmax.f32 %v2049_v34, %v1119_v41 }
 0x6b0   : > { %v1131_v45 = vmax.f32 %v1099_v1, %v1123_v42 }
 0x6b1   : > { %1140 = vrot.lane.b32.xlu1 %v1130_v7, %s1726_s28 }
 0x6b2   : > { %1142 = vrot.lane.b32.xlu2 %v1131_v45, %s1726_s28 }
 0x6b9   : > { %1201 = vrot.lane.b32.xlu1 %v1996_v29, %s1724_s26 }
 0x6f4   : > { %v1137_v46 = vpop.permute.xlu2 %1136 }
 0x70c   : > { %v1143_v17 = vpop.permute.xlu2 %1142 }
 0x70d   : > { %v1139_v47 = vpop.permute.xlu0 %1138 }
 0x70e   : > { %v1144_v48 = vsel %vm749_vm13, %v1137_v46, %v1139_v47 }
 0x70f   : > { %v1148_v49 = vmax.f32 %v1098_v36, %v1144_v48 }
 0x711   : > { %1150 = vst [vmem:[#allocation2 + $0x20] sm:$0xff] %v1148_v49 }
 0x718   : > { %v1155_v50 = vld [vmem:[#allocation2 + $0x20] sm:$0xfe] }
 0x719   : > { %v1161_v56 = vrot.slane %v1155_v50, 2 }
 0x71b   : > { %v1169_v62 = vmax.f32 %v1152_v31, %v1161_v56 }
 0x71d   : > { %v1175_v2 = vrot.slane %v1169_v62, 7 }
 0x723   : > { %v1141_v22 = vpop.permute.xlu1 %1140 }
 0x724   : > { %v1145_v55 = vsel %vm749_vm13, %v1141_v22, %v1143_v17 }
 0x725   : > { %v1149_v57 = vmax.f32 %v1099_v1, %v1145_v55 }
 0x727   : > { %1151 = vst [vmem:[#allocation2 + $0x38] sm:$0xff] %v1149_v57  ;;  %v1162_v61 = vrot.slane %v1149_v57, 2 }
 0x729   : > { %v1163_v63 = vsel %vm201_vm0, %v1161_v56, %v1162_v61  ;;  %v1165_v5 = vsel %vm201_vm0, %v1162_v61, %v1164_v0 }
 0x72a   : > { %v1170_v20 = vmax.f32 %v1148_v49, %v1163_v63 }
 0x72b   : > { %v1202_v16 = vpop.permute.xlu1 %1201 }
 0x72c   : > { %v1176_v3 = vrot.slane %v1170_v20, 7 }
 0x72e   : > { %v1154_v4 = vld [vmem:[#allocation2 + $0x38] sm:$0x7f]  ;;  %v1177_v6 = vsel %vm494_vm12, %v1175_v2, %v1176_v3 }
 0x72f   : > { %v1171_v8 = vmax.f32 %v1154_v4, %v1165_v5  ;;  %v1182_v10 = vmax.f32 %v1148_v49, %v1177_v6 }
 0x731   : > { %v1178_v43 = vrot.slane %v1171_v8, 7  ;;  %1540 = vst [vmem:[%s2183_s30 + $0x10] sm:$0xff] %v1182_v10  ;;  %1199 = vrot.lane.b32.xlu0 %v1182_v10, %s1724_s26 }
 0x733   : > { %v1179_v12 = vsel %vm494_vm12, %v1176_v3, %v1178_v43 }
 0x734   : > { %v1183_v13 = vmax.f32 %v1149_v57, %v1179_v12  ;;  %v1327_v12 = vld [vmem:[#allocation2 + $0x50] sm:$0x1] }
 0x736   : > { %1541 = vst [vmem:[%s2183_s30 + $0x18] sm:$0xff] %v1183_v13  ;;  %1203 = vrot.lane.b32.xlu2 %v1183_v13, %s1724_s26 }
 0x739   : > { %1205 = vrot.lane.b32.xlu0 %v2132_v51, %s1724_s26 }
 0x790   : > { %v1204_v14 = vpop.permute.xlu2 %1203 }
 0x791   : > { %v1215_v15 = vmax.f32 %v2049_v34, %v1204_v14 }
 0x793   : > { %1225 = vrot.lane.b32.xlu0 %v1215_v15, %s1726_s28  ;;  %v1334_v15 = vrot.slane %v1327_v12, 2 }
 0x79b   : > { %1286 = vrot.lane.b32.xlu0 %v1996_v29, %s1724_s26 }
 0x7a3   : > { %v1200_v18 = vpop.permute.xlu0 %1199 }
 0x7a4   : > { %v1207_v19 = vsel %vm334_vm8, %v1200_v18, %v1202_v16  ;;  %v1213_v44 = vmax.f32 %v2025_v11, %v1200_v18 }
 0x7a5   : > { %v1214_v35 = vmax.f32 %v1182_v10, %v1207_v19 }
 0x7a6   : > { %1221 = vrot.lane.b32.xlu1 %v1213_v44, %s1726_s28 }
 0x7a7   : > { %1223 = vrot.lane.b32.xlu2 %v1214_v35, %s1726_s28 }
 0x7ab   : > { %v1206_v23 = vpop.permute.xlu0 %1205 }
 0x7ac   : > { %v1208_v21 = vsel %vm334_vm8, %v1204_v14, %v1206_v23 }
 0x7ad   : > { %v1216_v24 = vmax.f32 %v1183_v13, %v1208_v21 }
 0x7af   : > { %1227 = vrot.lane.b32.xlu1 %v1216_v24, %s1726_s28 }
 0x801   : > { %v1224_v26 = vpop.permute.xlu2 %1223 }
 0x805   : > { %v1226_v30 = vpop.permute.xlu0 %1225 }
 0x80d   : > { %v1287_v50 = vpop.permute.xlu0 %1286 }
 0x818   : > { %v1222_v27 = vpop.permute.xlu1 %1221 }
 0x819   : > { %v1229_v52 = vsel %vm749_vm13, %v1222_v27, %v1224_v26 }
 0x81a   : > { %v1233_v53 = vmax.f32 %v1182_v10, %v1229_v52  ;;  %v1322_v10 = vld [vmem:[#allocation2 + $0x8] sm:$0x80] }
 0x81c   : > { %1235 = vst [vmem:[#allocation2 + $0x20] sm:$0xff] %v1233_v53 }
 0x821   : > { %v1228_v54 = vpop.permute.xlu1 %1227 }
 0x822   : > { %v1230_v32 = vsel %vm749_vm13, %v1226_v30, %v1228_v54 }
 0x823   : > { %v1234_v36 = vmax.f32 %v1183_v13, %v1230_v32  ;;  %v1240_v37 = vld [vmem:[#allocation2 + $0x20] sm:$0xfe] }
 0x824   : > { %v1246_v58 = vrot.slane %v1240_v37, 2 }
 0x825   : > { %1236 = vst [vmem:[#allocation2 + $0x38] sm:$0xff] %v1234_v36  ;;  %v1247_v1 = vrot.slane %v1234_v36, 2 }
 0x826   : > { %v1254_v25 = vmax.f32 %v1237_v33, %v1246_v58 }
 0x827   : > { %v1248_v28 = vsel %vm201_vm0, %v1246_v58, %v1247_v1  ;;  %v1250_v42 = vsel %vm201_vm0, %v1247_v1, %v1249_v59 }
 0x828   : > { %v1255_v9 = vmax.f32 %v1233_v53, %v1248_v28  ;;  %v1260_v39 = vrot.slane %v1254_v25, 7 }
 0x82a   : > { %v1261_v40 = vrot.slane %v1255_v9, 7 }
 0x82c   : > { %v1239_v41 = vld [vmem:[#allocation2 + $0x38] sm:$0x7f]  ;;  %v1262_v7 = vsel %vm494_vm12, %v1260_v39, %v1261_v40 }
 0x82d   : > { %v1256_v45 = vmax.f32 %v1239_v41, %v1250_v42  ;;  %v1267_v46 = vmax.f32 %v1233_v53, %v1262_v7  ;;  %v1407_v41 = vld [vmem:[#allocation2 + $0x8] sm:$0x80] }
 0x82f   : > { %v1263_v47 = vrot.slane %v1256_v45, 7  ;;  %1542 = vst [vmem:[%s2183_s30 + $0x20] sm:$0xff] %v1267_v46  ;;  %1284 = vrot.lane.b32.xlu2 %v1267_v46, %s1724_s26 }
 0x831   : > { %v1264_v48 = vsel %vm494_vm12, %v1261_v40, %v1263_v47  ;;  %v1412_v40 = vld [vmem:[#allocation2 + $0x50] sm:$0x1] }
 0x832   : > { %v1268_v49 = vmax.f32 %v1234_v36, %v1264_v48  ;;  %v1419_v42 = vrot.slane %v1412_v40, 2 }
 0x834   : > { %1543 = vst [vmem:[%s2183_s30 + $0x28] sm:$0xff] %v1268_v49  ;;  %1288 = vrot.lane.b32.xlu1 %v1268_v49, %s1724_s26 }
 0x837   : > { %1290 = vrot.lane.b32.xlu2 %v2132_v51, %s1724_s26 }
 0x889   : > { %v1285_v17 = vpop.permute.xlu2 %1284 }
 0x88a   : > { %v1292_v22 = vsel %vm334_vm8, %v1285_v17, %v1287_v50  ;;  %v1298_v55 = vmax.f32 %v2025_v11, %v1285_v17 }
 0x88b   : > { %v1299_v56 = vmax.f32 %v1267_v46, %v1292_v22 }
 0x88c   : > { %1306 = vrot.lane.b32.xlu0 %v1298_v55, %s1726_s28 }
 0x88d   : > { %1308 = vrot.lane.b32.xlu1 %v1299_v56, %s1726_s28 }
 0x891   : > { %v1291_v31 = vpop.permute.xlu2 %1290 }
 0x8a6   : > { %v1289_v57 = vpop.permute.xlu1 %1288 }
 0x8a7   : > { %v1300_v60 = vmax.f32 %v2049_v34, %v1289_v57  ;;  %v1293_v61 = vsel %vm334_vm8, %v1289_v57, %v1291_v31 }
 0x8a8   : > { %v1301_v62 = vmax.f32 %v1268_v49, %v1293_v61 }
 0x8a9   : > { %1310 = vrot.lane.b32.xlu2 %v1300_v60, %s1726_s28 }
 0x8aa   : > { %1312 = vrot.lane.b32.xlu0 %v1301_v62, %s1726_s28 }
 0x8b1   : > { %1371 = vrot.lane.b32.xlu2 %v1996_v29, %s1724_s26 }
 0x8fe   : > { %v1307_v63 = vpop.permute.xlu0 %1306 }
 0x8ff   : > { %v1309_v0 = vpop.permute.xlu1 %1308 }
 0x900   : > { %v1314_v20 = vsel %vm749_vm13, %v1307_v63, %v1309_v0 }
 0x901   : > { %v1318_v2 = vmax.f32 %v1267_v46, %v1314_v20 }
 0x903   : > { %1320 = vst [vmem:[#allocation2 + $0x20] sm:$0xff] %v1318_v2  ;;  %v1311_v4 = vpop.permute.xlu2 %1310 }
 0x90a   : > { %v1325_v3 = vld [vmem:[#allocation2 + $0x20] sm:$0xfe] }
 0x90b   : > { %v1331_v6 = vrot.slane %v1325_v3, 2  ;;  %v1372_v53 = vpop.permute.xlu2 %1371 }
 0x90d   : > { %v1339_v14 = vmax.f32 %v1322_v10, %v1331_v6 }
 0x90f   : > { %v1345_v18 = vrot.slane %v1339_v14, 7 }
 0x91c   : > { %v1313_v5 = vpop.permute.xlu0 %1312 }
 0x91d   : > { %v1315_v8 = vsel %vm749_vm13, %v1311_v4, %v1313_v5 }
 0x91e   : > { %v1319_v43 = vmax.f32 %v1268_v49, %v1315_v8 }
 0x920   : > { %1321 = vst [vmem:[#allocation2 + $0x38] sm:$0xff] %v1319_v43  ;;  %v1332_v13 = vrot.slane %v1319_v43, 2 }
 0x922   : > { %v1333_v29 = vsel %vm201_vm0, %v1331_v6, %v1332_v13  ;;  %v1335_v35 = vsel %vm201_vm0, %v1332_v13, %v1334_v15 }
 0x923   : > { %v1340_v16 = vmax.f32 %v1318_v2, %v1333_v29 }
 0x925   : > { %v1346_v19 = vrot.slane %v1340_v16, 7 }
 0x927   : > { %v1324_v44 = vld [vmem:[#allocation2 + $0x38] sm:$0x7f]  ;;  %v1347_v23 = vsel %vm494_vm12, %v1345_v18, %v1346_v19 }
 0x928   : > { %v1341_v21 = vmax.f32 %v1324_v44, %v1335_v35  ;;  %v1352_v24 = vmax.f32 %v1318_v2, %v1347_v23 }
 0x92a   : > { %v1348_v26 = vrot.slane %v1341_v21, 7  ;;  %1544 = vst [vmem:[%s2183_s30 + $0x30] sm:$0xff] %v1352_v24  ;;  %1369 = vrot.lane.b32.xlu1 %v1352_v24, %s1724_s26 }
 0x92c   : > { %v1349_v27 = vsel %vm494_vm12, %v1346_v19, %v1348_v26 }
 0x92d   : > { %v1353_v52 = vmax.f32 %v1319_v43, %v1349_v27 }
 0x92f   : > { %1545 = vst [vmem:[%s2183_s30 + $0x38] sm:$0xff] %v1353_v52  ;;  %1373 = vrot.lane.b32.xlu0 %v1353_v52, %s1724_s26 }
 0x932   : > { %1375 = vrot.lane.b32.xlu1 %v2132_v51, %s1724_s26 }
 0x99c   : > { %v1370_v30 = vpop.permute.xlu1 %1369 }
 0x99d   : > { %v1383_v54 = vmax.f32 %v2025_v11, %v1370_v30  ;;  %v1377_v32 = vsel %vm334_vm8, %v1370_v30, %v1372_v53 }
 0x99e   : > { %v1384_v33 = vmax.f32 %v1352_v24, %v1377_v32 }
 0x99f   : > { %1391 = vrot.lane.b32.xlu2 %v1383_v54, %s1726_s28 }
 0x9a0   : > { %1393 = vrot.lane.b32.xlu0 %v1384_v33, %s1726_s28 }
 0x9a1   : > { %v1374_v36 = vpop.permute.xlu0 %1373 }
 0x9a2   : > { %v1385_v37 = vmax.f32 %v2049_v34, %v1374_v36 }
 0x9a4   : > { %1395 = vrot.lane.b32.xlu1 %v1385_v37, %s1726_s28  ;;  %v1376_v58 = vpop.permute.xlu1 %1375 }
 0x9a5   : > { %v1378_v51 = vsel %vm334_vm8, %v1374_v36, %v1376_v58 }
 0x9a6   : > { %v1386_v38 = vmax.f32 %v1353_v52, %v1378_v51 }
 0x9a8   : > { %1397 = vrot.lane.b32.xlu2 %v1386_v38, %s1726_s28 }
 0x9f9   : > { %v1392_v11 = vpop.permute.xlu2 %1391 }
 0xa02   : > { %v1398_v59 = vpop.permute.xlu2 %1397 }
 0xa12   : > { %v1394_v1 = vpop.permute.xlu0 %1393 }
 0xa13   : > { %v1399_v25 = vsel %vm749_vm13, %v1392_v11, %v1394_v1 }
 0xa14   : > { %v1403_v28 = vmax.f32 %v1352_v24, %v1399_v25 }
 0xa16   : > { %v1396_v9 = vpop.permute.xlu1 %1395  ;;  %1405 = vst [vmem:[#allocation2 + $0x20] sm:$0xff] %v1403_v28 }
 0xa17   : > { %v1400_v39 = vsel %vm749_vm13, %v1396_v9, %v1398_v59 }
 0xa18   : > { %v1404_v34 = vmax.f32 %v1353_v52, %v1400_v39 }
 0xa1a   : > { %1406 = vst [vmem:[#allocation2 + $0x38] sm:$0xff] %v1404_v34  ;;  %v1417_v45 = vrot.slane %v1404_v34, 2 }
 0xa1c   : > { %v1420_v50 = vsel %vm201_vm0, %v1417_v45, %v1419_v42 }
 0xa1d   : > { %v1410_v7 = vld [vmem:[#allocation2 + $0x20] sm:$0xfe] }
 0xa1e   : > { %v1416_v46 = vrot.slane %v1410_v7, 2 }
 0xa20   : > { %v1418_v47 = vsel %vm201_vm0, %v1416_v46, %v1417_v45  ;;  %v1424_v48 = vmax.f32 %v1407_v41, %v1416_v46 }
 0xa21   : > { %v1409_v49 = vld [vmem:[#allocation2 + $0x38] sm:$0x7f]  ;;  %v1425_v17 = vmax.f32 %v1403_v28, %v1418_v47 }
 0xa22   : > { %v1426_v22 = vmax.f32 %v1409_v49, %v1420_v50  ;;  %v1430_v55 = vrot.slane %v1424_v48, 7 }
 0xa23   : > { %v1431_v56 = vrot.slane %v1425_v17, 7 }
 0xa24   : > { %v1433_v31 = vrot.slane %v1426_v22, 7 }
 0xa25   : > { %v1432_v57 = vsel %vm494_vm12, %v1430_v55, %v1431_v56 }
 0xa26   : > { %v1434_v60 = vsel %vm494_vm12, %v1431_v56, %v1433_v31  ;;  %v1437_v61 = vmax.f32 %v1403_v28, %v1432_v57 }
 0xa27   : > { %v1438_v62 = vmax.f32 %v1404_v34, %v1434_v60 }
 0xa28   : > { %1546 = vst [vmem:[%s2183_s30 + $0x40] sm:$0xff] %v1437_v61 }
 0xa29   : > { %1547 = vst [vmem:[%s2183_s30 + $0x48] sm:$0xff] %v1438_v62 }
 0xa2a   : > { %1678 = shalt.err (!%p1675_p7)
}
 0xa2b   : > { %s1728_s20 = smov 128   ;;  %s1729_s25 = smov 8  }
 0xa2c   : > { %1558 = dma.vmem_to_hbm [thread:$0]  (%p1786_p11), %s1456_s10, 1280, %s1458_s11, %s1443_s13, %s1728_s20, %s1728_s20, %s1729_s25  }
 0xa2d PF: > { %s1472_s26 = sand.u32 1, %s1705_s6   ;;  %p1565_p8 = pnand %p1533_p9, %p1790_p12 }
 0xa2e   : > { %s1473_s27 = scalar_lea.sflag [#allocation5], %s1472_s26 }
 0xa2f   : > { %p1566_p10 = pneg %p1565_p8 }
 0xa31   : > { %1700 = dma.done.wait (%p1566_p10), %s1473_s27, 1280  }
 0xa32   : > { %1702 = vsyncadd (%p1566_p10), %s1473_s27, 4294966016  ;;  %p14_p0 = scmp.ge.s32.totalorder %s1765_s12, 4   ;;  %s2316_s6 = smov %s1709_s7 }
 0xa33   : > { %s2317_s7 = smov %s1713_s8  ;;  %s2318_s8 = smov %s1777_s15 }
 0xa34   : > { %s2319_s9 = smov %s1765_s12  ;;  %16 = sbr.rel (!%p14_p0) target bundleno = 5 (0x5), region = 77 }
 0xa39   :  { %1479 = vsyncpa [#allocation4], 1 }
 0xa3a   :  { %1481 = vsyncpa [#allocation4 + $0x1], 1 }
 0xa3b   :  { %1482 = vsyncpa [#allocation5], 1 }
 0xa3c   :  { %1484 = vsyncpa [#allocation5 + $0x1], 1 }

</bundles_post_ra>
